<compile_context>
chip_gen: v7x
topology: tpu7x:2x2x1
jax: 0.10.0
libtpu: 0.0.40
codegen_flags: <defaults>
</compile_context>

<pallas_src>
import jax
import jax.numpy as jnp
from jax import lax
from jax.experimental import pallas as pl
from jax.experimental.pallas import tpu as pltpu


def _round_up(x, m):
    return ((x + m - 1) // m) * m


def _cdiv(a, b):
    return (a + b - 1) // b


def _choose_tile(batch, block_b):
    """Pick the batch tile bb and the padded batch Bp.

    bb is always a multiple of 128 so the lane-dense (1, bb) output block and
    the MXU M dimension stay tile-aligned.  It is capped at block_b, snapped
    up to a 256 multiple (v6e/v7x 256-wide MXU) when that costs no extra
    padding, and for batches >= 512 rows the grid keeps at least 2 steps so
    v7x's 2 TensorCores both get work over the "parallel" axis.
    """
    b128 = _round_up(batch, 128)
    nsteps = _cdiv(b128, max(_round_up(block_b, 128), 128))
    if b128 >= 512:
        nsteps = max(nsteps, 2)
    bb = _round_up(_cdiv(b128, nsteps), 128)
    bb256 = _round_up(bb, 256)
    if _round_up(b128, bb256) == _round_up(b128, bb):
        bb = bb256
    return bb, _round_up(b128, bb)


def critic_kernel(state_ref, action_ref,
                  w1_ref, b1_ref, g1_ref, beta1_ref,
                  w2_ref, b2_ref, g2_ref, beta2_ref,
                  wa_ref, ba_ref,
                  wq_ref, bq_ref,
                  out_ref):
    eps = 1e-5  # PyTorch LayerNorm default

    def layernorm(h, g, beta):
        # Single-pass LN in f32: both row reductions issue back-to-back.
        inv_n = 1.0 / h.shape[-1]
        mu = jnp.sum(h, axis=-1, keepdims=True) * inv_n
        sq = jnp.sum(h * h, axis=-1, keepdims=True) * inv_n
        var = jnp.maximum(sq - mu * mu, 0.0)   # guard against cancellation
        return (h - mu) * lax.rsqrt(var + eps) * g + beta

    # fc1 (+ LN + ReLU): bf16 MXU inputs (pre-cast in the wrapper), f32 accum.
    h1 = jnp.dot(state_ref[...], w1_ref[...],
                 preferred_element_type=jnp.float32) + b1_ref[...]
    h1 = layernorm(h1, g1_ref[...], beta1_ref[...])
    h1 = jnp.maximum(h1, 0.0).astype(jnp.bfloat16)

    # fc2 (+ LN)
    h2 = jnp.dot(h1, w2_ref[...], preferred_element_type=jnp.float32) + b2_ref[...]
    h2 = layernorm(h2, g2_ref[...], beta2_ref[...])

    # action branch (no ReLU here, matching the reference module)
    av = jnp.dot(action_ref[...], wa_ref[...],
                 preferred_element_type=jnp.float32) + ba_ref[...]

    sa = jnp.maximum(h2 + av, 0.0).astype(jnp.bfloat16)

    # q head on the MXU, produced directly lane-dense:
    #   (8, fc2) x (bb, fc2)^T -> (8, bb); only row 0 of wq is non-zero.
    q8 = lax.dot_general(wq_ref[...], sa,
                         dimension_numbers=(((1,), (1,)), ((), ())),
                         preferred_element_type=jnp.float32)
    out_ref[...] = (q8[0:1, :] + bq_ref[...]).astype(out_ref.dtype)


def critic_forward(state, action, params, *, block_b=512):
    """Critic forward pass.  Pads the batch to a multiple of the B tile."""
    B, state_dim = state.shape
    action_dim = action.shape[1]

    bb, Bp = _choose_tile(B, block_b)
    if Bp != B:
        state = jnp.pad(state, ((0, Bp - B), (0, 0)))
        action = jnp.pad(action, ((0, Bp - B), (0, 0)))

    # Cast activations to bf16 once here (weights are already bf16): halves the
    # per-step input DMA bytes and removes the per-step in-kernel casts.
    state = state.astype(jnp.bfloat16)
    action = action.astype(jnp.bfloat16)

    # q-head weight as a bf16 row padded to 8 sublanes so the trans-B matmul
    # is trivially tile-aligned; rows 1..7 are zero.
    wq8 = jnp.pad(params["wq"].astype(jnp.bfloat16), ((0, 7), (0, 0)))

    grid = (Bp // bb,)

    def row_spec(last):
        return pl.BlockSpec((bb, last), lambda i: (i, 0))

    def resident_spec(arr):
        # Full-array block, constant index_map -> fetched once, VMEM-resident.
        # (pl.Buffered(1) single-buffering skipped: params total ~70 KiB here.)
        return pl.BlockSpec(arr.shape, lambda i: (0, 0))

    args = (
        state, action,
        params["w1"], params["b1"], params["g1"], params["beta1"],
        params["w2"], params["b2"], params["g2"], params["beta2"],
        params["wa"], params["ba"],
        wq8, params["bq"],
    )
    in_specs = [row_spec(state_dim), row_spec(action_dim)]
    in_specs += [resident_spec(a) for a in args[2:]]

    out = pl.pallas_call(
        critic_kernel,
        out_shape=jax.ShapeDtypeStruct((1, Bp), jnp.float32),
        grid=grid,
        in_specs=in_specs,
        # Lane-dense output: one (1, bb) row per grid step (bb % 128 == 0).
        out_specs=pl.BlockSpec((1, bb), lambda i: (0, i)),
        compiler_params=pltpu.CompilerParams(
            dimension_semantics=("parallel",)),  # megacore / v7x 2-TC sharding
    )(*args)
    return out.reshape(Bp, 1)[:B]


def init_params(key, state_dim, action_dim, fc1_dim, fc2_dim):
    """Init mirroring the PyTorch module's custom uniform ranges.

    PyTorch Linear weight is (out, in); we store the transpose (in, out).
    Matmul weights (w1/w2/wa) are kept in bf16 (MXU inputs); biases, LayerNorm
    params and the q head stay f32.  wq is stored as a (1, fc2_dim) row.
    """
    ks = jax.random.split(key, 8)
    f1 = 1.0 / (fc1_dim ** 0.5)
    f2 = 1.0 / (fc2_dim ** 0.5)
    f3 = 1.0 / (fc2_dim ** 0.5)
    f4 = 0.003

    def u(k, shape, lim, dtype=jnp.float32):
        return jax.random.uniform(k, shape, jnp.float32, -lim, lim).astype(dtype)

    return {
        "w1": u(ks[0], (state_dim, fc1_dim), f1, jnp.bfloat16),
        "b1": u(ks[1], (1, fc1_dim), f1),
        "w2": u(ks[2], (fc1_dim, fc2_dim), f2, jnp.bfloat16),
        "b2": u(ks[3], (1, fc2_dim), f2),
        # LayerNorm affine params (PyTorch defaults: weight=1, bias=0)
        "g1": jnp.ones((1, fc1_dim), jnp.float32),
        "beta1": jnp.zeros((1, fc1_dim), jnp.float32),
        "g2": jnp.ones((1, fc2_dim), jnp.float32),
        "beta2": jnp.zeros((1, fc2_dim), jnp.float32),
        "wa": u(ks[4], (action_dim, fc2_dim), f3, jnp.bfloat16),
        "ba": u(ks[5], (1, fc2_dim), f3),
        "wq": u(ks[6], (1, fc2_dim), f4),
        "bq": u(ks[7], (1, 1), f4),
    }


def critic_reference_bf16(state, action, p):
    """Pure-JAX reference mirroring the kernel's bf16-input math."""
    eps = 1e-5

    def ln(h, g, b):
        mu = h.mean(-1, keepdims=True)
        var = jnp.maximum((h * h).mean(-1, keepdims=True) - mu * mu, 0.0)
        return (h - mu) * lax.rsqrt(var + eps) * g + b

    s = state.astype(jnp.bfloat16)
    a = action.astype(jnp.bfloat16)
    h1 = jnp.dot(s, p["w1"], preferred_element_type=jnp.float32) + p["b1"]
    h1 = jnp.maximum(ln(h1, p["g1"], p["beta1"]), 0.0).astype(jnp.bfloat16)
    h2 = jnp.dot(h1, p["w2"], preferred_element_type=jnp.float32) + p["b2"]
    h2 = ln(h2, p["g2"], p["beta2"])
    av = jnp.dot(a, p["wa"], preferred_element_type=jnp.float32) + p["ba"]
    sa = jnp.maximum(h2 + av, 0.0).astype(jnp.bfloat16)
    return jnp.dot(sa, p["wq"].astype(jnp.bfloat16).T,
                   preferred_element_type=jnp.float32) + p["bq"]


def critic_reference_f32(state, action, p):
    """Full-f32, two-pass-LN reference matching the PyTorch forward."""
    eps = 1e-5
    w1 = p["w1"].astype(jnp.float32)
    w2 = p["w2"].astype(jnp.float32)
    wa = p["wa"].astype(jnp.float32)
    h1 = state @ w1 + p["b1"]
    mu = h1.mean(-1, keepdims=True)
    var = ((h1 - mu) ** 2).mean(-1, keepdims=True)
    h1 = (h1 - mu) / jnp.sqrt(var + eps) * p["g1"] + p["beta1"]
    h1 = jnp.maximum(h1, 0.0)
    h2 = h1 @ w2 + p["b2"]
    mu = h2.mean(-1, keepdims=True)
    var = ((h2 - mu) ** 2).mean(-1, keepdims=True)
    h2 = (h2 - mu) / jnp.sqrt(var + eps) * p["g2"] + p["beta2"]
    av = action @ wa + p["ba"]
    sa = jnp.maximum(h2 + av, 0.0)
    return sa @ p["wq"].T + p["bq"]


if __name__ == "__main__":
    # Small shapes consistent with the module; hidden dims chosen lane-dense
    # (128; prefer 256 on v6e/v7x if the model's dims are tunable).
    B, state_dim, action_dim = 50, 16, 4
    fc1_dim, fc2_dim = 128, 128

    key = jax.random.PRNGKey(0)
    k_state, k_action, k_params, k_s2, k_a2 = jax.random.split(key, 5)
    state = jax.random.normal(k_state, (B, state_dim), jnp.float32)
    action = jax.random.normal(k_action, (B, action_dim), jnp.float32)
    params = init_params(k_params, state_dim, action_dim, fc1_dim, fc2_dim)

    # Case 1: small batch -> single grid step (bb = 128, Bp = 128).
    out = jax.block_until_ready(critic_forward(state, action, params))
    assert out.shape == (B, 1)
    ref_b = critic_reference_bf16(state, action, params)
    ref_f = critic_reference_f32(state, action, params)
    assert jnp.allclose(out, ref_b, atol=5e-3, rtol=5e-2), \
        float(jnp.max(jnp.abs(out - ref_b)))
    assert jnp.allclose(out, ref_f, atol=2e-2, rtol=5e-2), \
        float(jnp.max(jnp.abs(out - ref_f)))

    # Case 2: bigger batch with small block_b to exercise the multi-step grid
    # and batch padding (B=300, block_b=128 -> bb=128, Bp=384, grid=(3,)).
    B2 = 300
    state2 = jax.random.normal(k_s2, (B2, state_dim), jnp.float32)
    action2 = jax.random.normal(k_a2, (B2, action_dim), jnp.float32)
    out2 = jax.block_until_ready(
        critic_forward(state2, action2, params, block_b=128))
    assert out2.shape == (B2, 1)
    ref2_b = critic_reference_bf16(state2, action2, params)
    ref2_f = critic_reference_f32(state2, action2, params)
    assert jnp.allclose(out2, ref2_b, atol=5e-3, rtol=5e-2), \
        float(jnp.max(jnp.abs(out2 - ref2_b)))
    assert jnp.allclose(out2, ref2_f, atol=2e-2, rtol=5e-2), \
        float(jnp.max(jnp.abs(out2 - ref2_f)))

    # TODO(synk): save_model/load_model (file I/O) are host-side utilities,
    # not part of the forward pass; no kernel equivalent needed.
    print("KERNEL_OK")
</pallas_src>

<mosaic_0001>
module attributes {stable_mosaic.version = 11 : i64} {
  func.func @critic_kernel(%arg0: i32, %arg1: memref<128x16xbf16, #tpu.memory_space<vmem>>, %arg2: memref<128x4xbf16, #tpu.memory_space<vmem>>, %arg3: memref<16x128xbf16, #tpu.memory_space<vmem>>, %arg4: memref<1x128xf32, #tpu.memory_space<vmem>>, %arg5: memref<1x128xf32, #tpu.memory_space<vmem>>, %arg6: memref<1x128xf32, #tpu.memory_space<vmem>>, %arg7: memref<128x128xbf16, #tpu.memory_space<vmem>>, %arg8: memref<1x128xf32, #tpu.memory_space<vmem>>, %arg9: memref<1x128xf32, #tpu.memory_space<vmem>>, %arg10: memref<1x128xf32, #tpu.memory_space<vmem>>, %arg11: memref<4x128xbf16, #tpu.memory_space<vmem>>, %arg12: memref<1x128xf32, #tpu.memory_space<vmem>>, %arg13: memref<8x128xbf16, #tpu.memory_space<vmem>>, %arg14: memref<1x1xf32, #tpu.memory_space<vmem>>, %arg15: memref<1x128xf32, #tpu.memory_space<vmem>>) attributes {dimension_semantics = [#tpu.dimension_semantics<parallel>], iteration_bounds = array<i64: 1>, scalar_prefetch = 0 : i64, scratch_operands = 0 : i64, tpu.core_type = #tpu.core_type<tc>, window_params = [{transform_indices = @transform_0, window_bounds = array<i64: 128, 16>}, {transform_indices = @transform_1, window_bounds = array<i64: 128, 4>}, {pipeline_mode = #tpu.pipeline_mode<synchronous>, transform_indices = @transform_2, window_bounds = array<i64: 16, 128>}, {pipeline_mode = #tpu.pipeline_mode<synchronous>, transform_indices = @transform_3, window_bounds = array<i64: 1, 128>}, {pipeline_mode = #tpu.pipeline_mode<synchronous>, transform_indices = @transform_4, window_bounds = array<i64: 1, 128>}, {pipeline_mode = #tpu.pipeline_mode<synchronous>, transform_indices = @transform_5, window_bounds = array<i64: 1, 128>}, {pipeline_mode = #tpu.pipeline_mode<synchronous>, transform_indices = @transform_6, window_bounds = array<i64: 128, 128>}, {pipeline_mode = #tpu.pipeline_mode<synchronous>, transform_indices = @transform_7, window_bounds = array<i64: 1, 128>}, {pipeline_mode = #tpu.pipeline_mode<synchronous>, transform_indices = @transform_8, window_bounds = array<i64: 1, 128>}, {pipeline_mode = #tpu.pipeline_mode<synchronous>, transform_indices = @transform_9, window_bounds = array<i64: 1, 128>}, {pipeline_mode = #tpu.pipeline_mode<synchronous>, transform_indices = @transform_10, window_bounds = array<i64: 4, 128>}, {pipeline_mode = #tpu.pipeline_mode<synchronous>, transform_indices = @transform_11, window_bounds = array<i64: 1, 128>}, {pipeline_mode = #tpu.pipeline_mode<synchronous>, transform_indices = @transform_12, window_bounds = array<i64: 8, 128>}, {pipeline_mode = #tpu.pipeline_mode<synchronous>, transform_indices = @transform_13, window_bounds = array<i64: 1, 1>}, {transform_indices = @transform_14, window_bounds = array<i64: 1, 128>}]} {
    %c0 = arith.constant 0 : index
    %c0_0 = arith.constant 0 : index
    %0 = vector.load %arg1[%c0, %c0_0] : memref<128x16xbf16, #tpu.memory_space<vmem>>, vector<128x16xbf16>
    %c0_1 = arith.constant 0 : index
    %c0_2 = arith.constant 0 : index
    %1 = vector.load %arg3[%c0_1, %c0_2] : memref<16x128xbf16, #tpu.memory_space<vmem>>, vector<16x128xbf16>
    %cst = arith.constant dense<0.000000e+00> : vector<128x128xf32>
    %2 = tpu.matmul %0, %1, %cst {dimension_numbers = #tpu.dot_dimension_numbers<[1], [0], [0], [1], [0, 0, 1, 1], [], []>} : vector<128x16xbf16>, vector<16x128xbf16>, vector<128x128xf32> -> vector<128x128xf32>
    %c0_3 = arith.constant 0 : index
    %c0_4 = arith.constant 0 : index
    %3 = vector.load %arg4[%c0_3, %c0_4] : memref<1x128xf32, #tpu.memory_space<vmem>>, vector<1x128xf32>
    %4 = vector.broadcast %3 : vector<1x128xf32> to vector<128x128xf32>
    %5 = arith.addf %2, %4 : vector<128x128xf32>
    %c0_5 = arith.constant 0 : index
    %c0_6 = arith.constant 0 : index
    %6 = vector.load %arg5[%c0_5, %c0_6] : memref<1x128xf32, #tpu.memory_space<vmem>>, vector<1x128xf32>
    %c0_7 = arith.constant 0 : index
    %c0_8 = arith.constant 0 : index
    %7 = vector.load %arg6[%c0_7, %c0_8] : memref<1x128xf32, #tpu.memory_space<vmem>>, vector<1x128xf32>
    %cst_9 = arith.constant dense<0.000000e+00> : vector<128xf32>
    %8 = vector.multi_reduction <add>, %5, %cst_9 [1] : vector<128x128xf32> to vector<128xf32>
    %9 = vector.shape_cast %8 : vector<128xf32> to vector<128x1xf32>
    %cst_10 = arith.constant 7.812500e-03 : f32
    %10 = vector.broadcast %cst_10 : f32 to vector<128x1xf32>
    %11 = arith.mulf %9, %10 : vector<128x1xf32>
    %12 = arith.mulf %5, %5 : vector<128x128xf32>
    %cst_11 = arith.constant dense<0.000000e+00> : vector<128xf32>
    %13 = vector.multi_reduction <add>, %12, %cst_11 [1] : vector<128x128xf32> to vector<128xf32>
    %14 = vector.shape_cast %13 : vector<128xf32> to vector<128x1xf32>
    %cst_12 = arith.constant 7.812500e-03 : f32
    %15 = vector.broadcast %cst_12 : f32 to vector<128x1xf32>
    %16 = arith.mulf %14, %15 : vector<128x1xf32>
    %17 = arith.mulf %11, %11 : vector<128x1xf32>
    %18 = arith.subf %16, %17 : vector<128x1xf32>
    %cst_13 = arith.constant 0.000000e+00 : f32
    %19 = vector.broadcast %cst_13 : f32 to vector<128x1xf32>
    %20 = arith.maximumf %18, %19 : vector<128x1xf32>
    %21 = vector.broadcast %11 : vector<128x1xf32> to vector<128x128xf32>
    %22 = arith.subf %5, %21 : vector<128x128xf32>
    %cst_14 = arith.constant 9.99999974E-6 : f32
    %23 = vector.broadcast %cst_14 : f32 to vector<128x1xf32>
    %24 = arith.addf %20, %23 : vector<128x1xf32>
    %25 = math.rsqrt %24 : vector<128x1xf32>
    %26 = vector.broadcast %25 : vector<128x1xf32> to vector<128x128xf32>
    %27 = arith.mulf %22, %26 : vector<128x128xf32>
    %28 = vector.broadcast %6 : vector<1x128xf32> to vector<128x128xf32>
    %29 = arith.mulf %27, %28 : vector<128x128xf32>
    %30 = vector.broadcast %7 : vector<1x128xf32> to vector<128x128xf32>
    %31 = arith.addf %29, %30 : vector<128x128xf32>
    %cst_15 = arith.constant 0.000000e+00 : f32
    %32 = vector.broadcast %cst_15 : f32 to vector<128x128xf32>
    %33 = arith.maximumf %31, %32 : vector<128x128xf32>
    %34 = arith.truncf %33 : vector<128x128xf32> to vector<128x128xbf16>
    %c0_16 = arith.constant 0 : index
    %c0_17 = arith.constant 0 : index
    %35 = vector.load %arg7[%c0_16, %c0_17] : memref<128x128xbf16, #tpu.memory_space<vmem>>, vector<128x128xbf16>
    %cst_18 = arith.constant dense<0.000000e+00> : vector<128x128xf32>
    %36 = tpu.matmul %34, %35, %cst_18 {dimension_numbers = #tpu.dot_dimension_numbers<[1], [0], [0], [1], [0, 0, 1, 1], [], []>} : vector<128x128xbf16>, vector<128x128xbf16>, vector<128x128xf32> -> vector<128x128xf32>
    %c0_19 = arith.constant 0 : index
    %c0_20 = arith.constant 0 : index
    %37 = vector.load %arg8[%c0_19, %c0_20] : memref<1x128xf32, #tpu.memory_space<vmem>>, vector<1x128xf32>
    %38 = vector.broadcast %37 : vector<1x128xf32> to vector<128x128xf32>
    %39 = arith.addf %36, %38 : vector<128x128xf32>
    %c0_21 = arith.constant 0 : index
    %c0_22 = arith.constant 0 : index
    %40 = vector.load %arg9[%c0_21, %c0_22] : memref<1x128xf32, #tpu.memory_space<vmem>>, vector<1x128xf32>
    %c0_23 = arith.constant 0 : index
    %c0_24 = arith.constant 0 : index
    %41 = vector.load %arg10[%c0_23, %c0_24] : memref<1x128xf32, #tpu.memory_space<vmem>>, vector<1x128xf32>
    %cst_25 = arith.constant dense<0.000000e+00> : vector<128xf32>
    %42 = vector.multi_reduction <add>, %39, %cst_25 [1] : vector<128x128xf32> to vector<128xf32>
    %43 = vector.shape_cast %42 : vector<128xf32> to vector<128x1xf32>
    %cst_26 = arith.constant 7.812500e-03 : f32
    %44 = vector.broadcast %cst_26 : f32 to vector<128x1xf32>
    %45 = arith.mulf %43, %44 : vector<128x1xf32>
    %46 = arith.mulf %39, %39 : vector<128x128xf32>
    %cst_27 = arith.constant dense<0.000000e+00> : vector<128xf32>
    %47 = vector.multi_reduction <add>, %46, %cst_27 [1] : vector<128x128xf32> to vector<128xf32>
    %48 = vector.shape_cast %47 : vector<128xf32> to vector<128x1xf32>
    %cst_28 = arith.constant 7.812500e-03 : f32
    %49 = vector.broadcast %cst_28 : f32 to vector<128x1xf32>
    %50 = arith.mulf %48, %49 : vector<128x1xf32>
    %51 = arith.mulf %45, %45 : vector<128x1xf32>
    %52 = arith.subf %50, %51 : vector<128x1xf32>
    %cst_29 = arith.constant 0.000000e+00 : f32
    %53 = vector.broadcast %cst_29 : f32 to vector<128x1xf32>
    %54 = arith.maximumf %52, %53 : vector<128x1xf32>
    %55 = vector.broadcast %45 : vector<128x1xf32> to vector<128x128xf32>
    %56 = arith.subf %39, %55 : vector<128x128xf32>
    %cst_30 = arith.constant 9.99999974E-6 : f32
    %57 = vector.broadcast %cst_30 : f32 to vector<128x1xf32>
    %58 = arith.addf %54, %57 : vector<128x1xf32>
    %59 = math.rsqrt %58 : vector<128x1xf32>
    %60 = vector.broadcast %59 : vector<128x1xf32> to vector<128x128xf32>
    %61 = arith.mulf %56, %60 : vector<128x128xf32>
    %62 = vector.broadcast %40 : vector<1x128xf32> to vector<128x128xf32>
    %63 = arith.mulf %61, %62 : vector<128x128xf32>
    %64 = vector.broadcast %41 : vector<1x128xf32> to vector<128x128xf32>
    %65 = arith.addf %63, %64 : vector<128x128xf32>
    %c0_31 = arith.constant 0 : index
    %c0_32 = arith.constant 0 : index
    %66 = vector.load %arg2[%c0_31, %c0_32] : memref<128x4xbf16, #tpu.memory_space<vmem>>, vector<128x4xbf16>
    %c0_33 = arith.constant 0 : index
    %c0_34 = arith.constant 0 : index
    %67 = vector.load %arg11[%c0_33, %c0_34] : memref<4x128xbf16, #tpu.memory_space<vmem>>, vector<4x128xbf16>
    %cst_35 = arith.constant dense<0.000000e+00> : vector<128x128xf32>
    %68 = tpu.matmul %66, %67, %cst_35 {dimension_numbers = #tpu.dot_dimension_numbers<[1], [0], [0], [1], [0, 0, 1, 1], [], []>} : vector<128x4xbf16>, vector<4x128xbf16>, vector<128x128xf32> -> vector<128x128xf32>
    %c0_36 = arith.constant 0 : index
    %c0_37 = arith.constant 0 : index
    %69 = vector.load %arg12[%c0_36, %c0_37] : memref<1x128xf32, #tpu.memory_space<vmem>>, vector<1x128xf32>
    %70 = vector.broadcast %69 : vector<1x128xf32> to vector<128x128xf32>
    %71 = arith.addf %68, %70 : vector<128x128xf32>
    %72 = arith.addf %65, %71 : vector<128x128xf32>
    %cst_38 = arith.constant 0.000000e+00 : f32
    %73 = vector.broadcast %cst_38 : f32 to vector<128x128xf32>
    %74 = arith.maximumf %72, %73 : vector<128x128xf32>
    %75 = arith.truncf %74 : vector<128x128xf32> to vector<128x128xbf16>
    %c0_39 = arith.constant 0 : index
    %c0_40 = arith.constant 0 : index
    %76 = vector.load %arg13[%c0_39, %c0_40] : memref<8x128xbf16, #tpu.memory_space<vmem>>, vector<8x128xbf16>
    %cst_41 = arith.constant dense<0.000000e+00> : vector<8x128xf32>
    %77 = tpu.matmul %76, %75, %cst_41 {dimension_numbers = #tpu.dot_dimension_numbers<[1], [1], [0], [0], [0, 0, 1, 0], [], []>} : vector<8x128xbf16>, vector<128x128xbf16>, vector<8x128xf32> -> vector<8x128xf32>
    %78 = vector.extract_strided_slice %77 {offsets = [0, 0], sizes = [1, 128], strides = [1, 1]} : vector<8x128xf32> to vector<1x128xf32>
    %c0_42 = arith.constant 0 : index
    %c0_43 = arith.constant 0 : index
    %79 = vector.load %arg14[%c0_42, %c0_43] : memref<1x1xf32, #tpu.memory_space<vmem>>, vector<1x1xf32>
    %80 = vector.broadcast %79 : vector<1x1xf32> to vector<1x128xf32>
    %81 = arith.addf %78, %80 : vector<1x128xf32>
    %c0_44 = arith.constant 0 : index
    %c0_45 = arith.constant 0 : index
    %82 = vector.load %arg15[%c0_44, %c0_45] : memref<1x128xf32, #tpu.memory_space<vmem>>, vector<1x128xf32>
    tpu.vector_store %arg15[%c0_44, %c0_45], %81 {strides = array<i32>} : memref<1x128xf32, #tpu.memory_space<vmem>>, vector<1x128xf32>,
    return
  }
  func.func @transform_0(%arg0: i32) -> (i32, i32) {
    %c0_i32 = arith.constant 0 : i32
    %c0_i32_0 = arith.constant 0 : i32
    return %arg0, %c0_i32 : i32, i32
  }
  func.func @transform_1(%arg0: i32) -> (i32, i32) {
    %c0_i32 = arith.constant 0 : i32
    %c0_i32_0 = arith.constant 0 : i32
    return %arg0, %c0_i32 : i32, i32
  }
  func.func @transform_2(%arg0: i32) -> (i32, i32) {
    %c0_i32 = arith.constant 0 : i32
    %c0_i32_0 = arith.constant 0 : i32
    %c0_i32_1 = arith.constant 0 : i32
    return %c0_i32, %c0_i32_0 : i32, i32
  }
  func.func @transform_3(%arg0: i32) -> (i32, i32) {
    %c0_i32 = arith.constant 0 : i32
    %c0_i32_0 = arith.constant 0 : i32
    %c0_i32_1 = arith.constant 0 : i32
    return %c0_i32, %c0_i32_0 : i32, i32
  }
  func.func @transform_4(%arg0: i32) -> (i32, i32) {
    %c0_i32 = arith.constant 0 : i32
    %c0_i32_0 = arith.constant 0 : i32
    %c0_i32_1 = arith.constant 0 : i32
    return %c0_i32, %c0_i32_0 : i32, i32
  }
  func.func @transform_5(%arg0: i32) -> (i32, i32) {
    %c0_i32 = arith.constant 0 : i32
    %c0_i32_0 = arith.constant 0 : i32
    %c0_i32_1 = arith.constant 0 : i32
    return %c0_i32, %c0_i32_0 : i32, i32
  }
  func.func @transform_6(%arg0: i32) -> (i32, i32) {
    %c0_i32 = arith.constant 0 : i32
    %c0_i32_0 = arith.constant 0 : i32
    %c0_i32_1 = arith.constant 0 : i32
    return %c0_i32, %c0_i32_0 : i32, i32
  }
  func.func @transform_7(%arg0: i32) -> (i32, i32) {
    %c0_i32 = arith.constant 0 : i32
    %c0_i32_0 = arith.constant 0 : i32
    %c0_i32_1 = arith.constant 0 : i32
    return %c0_i32, %c0_i32_0 : i32, i32
  }
  func.func @transform_8(%arg0: i32) -> (i32, i32) {
    %c0_i32 = arith.constant 0 : i32
    %c0_i32_0 = arith.constant 0 : i32
    %c0_i32_1 = arith.constant 0 : i32
    return %c0_i32, %c0_i32_0 : i32, i32
  }
  func.func @transform_9(%arg0: i32) -> (i32, i32) {
    %c0_i32 = arith.constant 0 : i32
    %c0_i32_0 = arith.constant 0 : i32
    %c0_i32_1 = arith.constant 0 : i32
    return %c0_i32, %c0_i32_0 : i32, i32
  }
  func.func @transform_10(%arg0: i32) -> (i32, i32) {
    %c0_i32 = arith.constant 0 : i32
    %c0_i32_0 = arith.constant 0 : i32
    %c0_i32_1 = arith.constant 0 : i32
    return %c0_i32, %c0_i32_0 : i32, i32
  }
  func.func @transform_11(%arg0: i32) -> (i32, i32) {
    %c0_i32 = arith.constant 0 : i32
    %c0_i32_0 = arith.constant 0 : i32
    %c0_i32_1 = arith.constant 0 : i32
    return %c0_i32, %c0_i32_0 : i32, i32
  }
  func.func @transform_12(%arg0: i32) -> (i32, i32) {
    %c0_i32 = arith.constant 0 : i32
    %c0_i32_0 = arith.constant 0 : i32
    %c0_i32_1 = arith.constant 0 : i32
    return %c0_i32, %c0_i32_0 : i32, i32
  }
  func.func @transform_13(%arg0: i32) -> (i32, i32) {
    %c0_i32 = arith.constant 0 : i32
    %c0_i32_0 = arith.constant 0 : i32
    %c0_i32_1 = arith.constant 0 : i32
    return %c0_i32, %c0_i32_0 : i32, i32
  }
  func.func @transform_14(%arg0: i32) -> (i32, i32) {
    %c0_i32 = arith.constant 0 : i32
    %c0_i32_0 = arith.constant 0 : i32
    return %c0_i32, %arg0 : i32, i32
  }
}

</mosaic_0001>

<bundles_post_ra>
// kernel: tpu_custom_call.1
= control target key start
LH: loop header
LB: loop body
LE: loop exit
PB: predicated region body
PF: predicated region fallthrough
CT: control target
= control target key end

     0   :  { %s2298_s0 = inlined_call_operand.vmem [shape: bf16[128,16], index: 0, kind: input, shape index: {}]   ;;  %s2299_s1 = inlined_call_operand.vmem [shape: bf16[128,4], index: 1, kind: input, shape index: {}]   ;;  %s2300_s2 = inlined_call_operand.vmem [shape: bf16[16,128], index: 2, kind: input, shape index: {}]   ;;  %s2301_s3 = inlined_call_operand.vmem [shape: f32[1,128], index: 3, kind: input, shape index: {}]   ;;  %s2302_s4 = inlined_call_operand.vmem [shape: f32[1,128], index: 4, kind: input, shape index: {}]   ;;  %s2303_s5 = inlined_call_operand.vmem [shape: f32[1,128], index: 5, kind: input, shape index: {}]   ;;  %s2304_s6 = inlined_call_operand.vmem [shape: bf16[128,128], index: 6, kind: input, shape index: {}]   ;;  %s2305_s7 = inlined_call_operand.vmem [shape: f32[1,128], index: 7, kind: input, shape index: {}]   ;;  %s2306_s8 = inlined_call_operand.vmem [shape: f32[1,128], index: 8, kind: input, shape index: {}]   ;;  %s2307_s9 = inlined_call_operand.vmem [shape: f32[1,128], index: 9, kind: input, shape index: {}]   ;;  %s2308_s10 = inlined_call_operand.vmem [shape: bf16[4,128], index: 10, kind: input, shape index: {}]   ;;  %s2309_s11 = inlined_call_operand.vmem [shape: f32[1,128], index: 11, kind: input, shape index: {}]   ;;  %s2310_s12 = inlined_call_operand.vmem [shape: bf16[8,128], index: 12, kind: input, shape index: {}]   ;;  %s2311_s13 = inlined_call_operand.<no memory space> [shape: f32[1,1], index: 13, kind: input, shape index: {}]   ;;  %s2312_s14 = inlined_call_operand.hbm [shape: f32[1,128], index: 14, kind: output, shape index: {}]  }
   0x1   :  { %v19_v0 = vstv %s2311_s13 }
   0x2   :  { %20 = vst [vmem:[#allocation2] sm:$0x1] %v19_v0 }
   0x3   :  { %v1458_v1 = vld [vmem:[%s2300_s2] sm:$0xff]   ;;  %vm122_vm0 = vcmask 130048   ;;  %v1460_v3 = vld [vmem:[%s2298_s0 + $0x8] sm:$0xff]   ;;  %v1461_v4 = vld [vmem:[%s2298_s0 + $0x10] sm:$0xff]  }
   0x4   :  { %v1459_v2 = vld [vmem:[%s2298_s0] sm:$0xff]   ;;  %1364 = vmatprep.subr.bf16.mxu0 %v1458_v1  ;;  %v1462_v5 = vld [vmem:[%s2298_s0 + $0x18] sm:$0xff]   ;;  %v1464_v7 = vld [vmem:[%s2298_s0 + $0x28] sm:$0xff]  }
   0x5   :  { %1365 = vmatpush3.bf16.msra.mxu0 %v1458_v1  ;;  %1366 = vmatprep.mubr.msk.bf16.mxu0 %vm122_vm0, %v1459_v2  ;;  %v1463_v6 = vld [vmem:[%s2298_s0 + $0x20] sm:$0xff]   ;;  %v1465_v8 = vld [vmem:[%s2298_s0 + $0x30] sm:$0xff]  }
   0x8   :  { %1367 = vmatmul.mubr.msk.bf16.vlgmr.msra.gmra.mrb[0].mxu0 %vm122_vm0, %v1460_v3 }
   0x9   :  { %1370 = vmatprep.mubr.msk.bf16.mxu0 %vm122_vm0, %v1461_v4 }
  0x10   :  { %1371 = vmatmul.mubr.msk.bf16.gmra.mrb[4].mxu0 %vm122_vm0, %v1462_v5 }
  0x11   :  { %1374 = vmatprep.mubr.msk.bf16.mxu0 %vm122_vm0, %v1463_v6 }
  0x12   :  { %21 = vsyncpa [#allocation4], 0  ;;  %v1466_v9 = vld [vmem:[%s2298_s0 + $0x38] sm:$0xff]   ;;  %v1691_v10 = vld [vmem:[%s2301_s3] ss:$0 sm:$0xff]  ;;  %vm1065_vm1 = vcmask 1041408  }
  0x13   :  { %v1467_v38 = vld [vmem:[%s2304_s6] sm:$0xff]   ;;  %v1468_v43 = vld [vmem:[%s2304_s6 + $0x8] sm:$0xff]   ;;  %v1469_v46 = vld [vmem:[%s2304_s6 + $0x10] sm:$0xff]   ;;  %vm1040_vm2 = vcmask 31744   ;;  %vm1572_vm3 = vmmov 0  }
  0x14   :  { %1382 = vmatprep.subr.bf16.mxu0 %v1467_v38  ;;  %v1470_v49 = vld [vmem:[%s2304_s6 + $0x18] sm:$0xff]   ;;  %v1471_v52 = vld [vmem:[%s2304_s6 + $0x20] sm:$0xff]   ;;  %v1472_v55 = vld [vmem:[%s2304_s6 + $0x28] sm:$0xff]  }
  0x15   :  { %1383 = vmatpush3.bf16.msra.mxu0 %v1467_v38  ;;  %v1473_v58 = vld [vmem:[%s2304_s6 + $0x30] sm:$0xff]   ;;  %v1474_v61 = vld [vmem:[%s2304_s6 + $0x38] sm:$0xff]   ;;  %v992_v3 = vld [vmem:[%s2308_s10] sm:$0x3] }
  0x16   :  { %1384 = vmatprep.subr.bf16.mxu0 %v1468_v43  ;;  %v1475_v4 = vld [vmem:[%s2299_s1] sm:$0xff]   ;;  %1452 = vmatprep.subr.msk.bf16.mxu1 %vm1065_vm1, %v992_v3  ;;  %v1067_v5 = vsel %vm1065_vm1, %v992_v3, 0  ;;  %v1476_v6 = vld [vmem:[%s2299_s1 + $0x8] sm:$0xff]  }
  0x17   :  { %1415 = vmatpush3.bf16.msra.mxu1 %v1067_v5  ;;  %1416 = vmatprep.mubr.msk.bf16.mxu1 %vm1040_vm2, %v1475_v4 }
  0x18   :  { %1375 = vmatmul.mubr.msk.bf16.gmra.mrb[8].mxu0 %vm122_vm0, %v1464_v7  ;;  %v1477_v7 = vld [vmem:[%s2299_s1 + $0x10] sm:$0xff]  }
  0x19   :  { %1378 = vmatprep.mubr.msk.bf16.mxu0 %vm122_vm0, %v1465_v8  ;;  %1385 = vmatpush3.bf16.msra.mxu0 %v1468_v43  ;;  %v1478_v8 = vld [vmem:[%s2299_s1 + $0x18] sm:$0xff]  }
  0x1a   :  { %1386 = vmatprep.subr.bf16.mxu0 %v1469_v46  ;;  %1417 = vmatmul.mubr.msk.bf16.vlgmr.msra.gmra.mrb[0].mxu1 %vm1040_vm2, %v1476_v6 }
  0x1b   :  { %1420 = vmatprep.mubr.msk.bf16.mxu1 %vm1040_vm2, %v1477_v7 }
  0x1d   :  { %1387 = vmatpush3.bf16.msra.mxu0 %v1469_v46 }
  0x1e   :  { %1388 = vmatprep.subr.bf16.mxu0 %v1470_v49 }
  0x20   :  { %1379 = vmatmul.mubr.msk.bf16.gmra.mrb[12].mxu0 %vm122_vm0, %v1466_v9  ;;  %v1479_v9 = vld [vmem:[%s2299_s1 + $0x20] sm:$0xff]  }
  0x21   :  { %1389 = vmatpush3.bf16.msra.mxu0 %v1470_v49 }
  0x22   :  { %1390 = vmatprep.subr.bf16.mxu0 %v1471_v52  ;;  %1421 = vmatmul.mubr.msk.bf16.gmra.mrb[4].mxu1 %vm1040_vm2, %v1478_v8 }
  0x23   :  { %1424 = vmatprep.mubr.msk.bf16.mxu1 %vm1040_vm2, %v1479_v9 }
  0x25   :  { %1391 = vmatpush3.bf16.msra.mxu0 %v1471_v52 }
  0x26   :  { %1392 = vmatprep.subr.bf16.mxu0 %v1472_v55 }
  0x29   :  { %1393 = vmatpush3.bf16.msra.mxu0 %v1472_v55 }
  0x2a   :  { %1394 = vmatprep.subr.bf16.mxu0 %v1473_v58 }
  0x2d   :  { %1395 = vmatpush3.bf16.msra.mxu0 %v1473_v58 }
  0x2e   :  { %1396 = vmatprep.subr.bf16.mxu0 %v1474_v61 }
  0x31   :  { %1397 = vmatpush3.bf16.msra.mxu0 %v1474_v61 }
  0xdb   :  { %v1368_v11 = vpop.f32.mrb[0].mxu0 }
  0xdc   :  { %v1694_v12 = vadd.f32 %v1368_v11, %v1691_v10  ;;  %v181_v13 = vpop.f32.mrb[1].mxu0 }
  0xdd   :  { %v1697_v14 = vadd.f32 %v1691_v10, %v181_v13  ;;  %v1369_v15 = vpop.f32.mrb[2].mxu0 }
  0xde   :  { %250 = vadd.xlane.f32.xlu1 %v1694_v12  ;;  %v184_v16 = vpop.f32.mrb[3].mxu0  ;;  %v1702_v17 = vadd.f32 %v1369_v15, %v1691_v10  ;;  %v296_v26 = vmul.f32 %v1694_v12, %v1694_v12 }
  0xdf   :  { %246 = vadd.xlane.f32.xlu0 %v1697_v14  ;;  %v1705_v18 = vadd.f32 %v1691_v10, %v184_v16  ;;  %v294_v22 = vmul.f32 %v1697_v14, %v1697_v14 }
  0xe0   :  { %v297_v25 = vmul.f32 %v1702_v17, %v1702_v17 }
  0xe1   :  { %v295_v20 = vmul.f32 %v1705_v18, %v1705_v18 }
  0xe2   :  { %252 = vadd.xlane.f32.xlu1 %v1702_v17 }
  0xe3   :  { %248 = vadd.xlane.f32.xlu0 %v1705_v18  ;;  %v1372_v19 = vpop.f32.mrb[4].mxu0 }
  0xe4   :  { %v197_v21 = vpop.f32.mrb[5].mxu0  ;;  %v1721_v30 = vadd.f32 %v1372_v19, %v1691_v10 }
  0xe5   :  { %v1373_v23 = vpop.f32.mrb[6].mxu0  ;;  %v1729_v34 = vadd.f32 %v1691_v10, %v197_v21 }
  0xe6   :  { %312 = vadd.xlane.f32.xlu1 %v295_v20  ;;  %v200_v24 = vpop.f32.mrb[7].mxu0  ;;  %v1718_v27 = vadd.f32 %v1373_v23, %v1691_v10  ;;  %v300_v44 = vmul.f32 %v1721_v30, %v1721_v30 }
  0xe7   :  { %310 = vadd.xlane.f32.xlu0 %v294_v22  ;;  %v1726_v33 = vadd.f32 %v1691_v10, %v200_v24  ;;  %v298_v39 = vmul.f32 %v1729_v34, %v1729_v34 }
  0xe8   :  { %v301_v42 = vmul.f32 %v1718_v27, %v1718_v27 }
  0xe9   :  { %v299_v36 = vmul.f32 %v1726_v33, %v1726_v33 }
  0xea   :  { %316 = vadd.xlane.f32.xlu1 %v297_v25 }
  0xeb   :  { %314 = vadd.xlane.f32.xlu0 %v296_v26  ;;  %v1376_v28 = vpop.f32.mrb[8].mxu0 }
  0xec   :  { %v213_v29 = vpop.f32.mrb[9].mxu0  ;;  %v1754_v47 = vadd.f32 %v1376_v28, %v1691_v10 }
  0xed   :  { %v1377_v31 = vpop.f32.mrb[10].mxu0  ;;  %v1765_v50 = vadd.f32 %v1691_v10, %v213_v29 }
  0xee   :  { %260 = vadd.xlane.f32.xlu1 %v1718_v27  ;;  %v216_v32 = vpop.f32.mrb[11].mxu0  ;;  %v1748_v45 = vadd.f32 %v1377_v31, %v1691_v10  ;;  %v304_v56 = vmul.f32 %v1754_v47, %v1754_v47 }
  0xef   :  { %258 = vadd.xlane.f32.xlu0 %v1721_v30  ;;  %v1759_v48 = vadd.f32 %v1691_v10, %v216_v32  ;;  %v302_v53 = vmul.f32 %v1765_v50, %v1765_v50 }
  0xf0   :  { %v305_v54 = vmul.f32 %v1748_v45, %v1748_v45 }
  0xf1   :  { %v303_v51 = vmul.f32 %v1759_v48, %v1759_v48 }
  0xf2   :  { %256 = vadd.xlane.f32.xlu1 %v1726_v33 }
  0xf3   :  { %254 = vadd.xlane.f32.xlu0 %v1729_v34  ;;  %v1380_v35 = vpop.f32.mrb[12].mxu0 }
  0xf4   :  { %v229_v37 = vpop.f32.mrb[13].mxu0  ;;  %v1790_v59 = vadd.f32 %v1380_v35, %v1691_v10 }
  0xf5   :  { %v1381_v40 = vpop.f32.mrb[14].mxu0  ;;  %v1801_v62 = vadd.f32 %v1691_v10, %v229_v37 }
  0xf6   :  { %320 = vadd.xlane.f32.xlu1 %v299_v36  ;;  %v232_v41 = vpop.f32.mrb[15].mxu0  ;;  %v1784_v57 = vadd.f32 %v1381_v40, %v1691_v10  ;;  %v308_v2 = vmul.f32 %v1790_v59, %v1790_v59 }
  0xf7   :  { %318 = vadd.xlane.f32.xlu0 %v298_v39  ;;  %v1795_v60 = vadd.f32 %v1691_v10, %v232_v41  ;;  %v306_v0 = vmul.f32 %v1801_v62, %v1801_v62  ;;  %v1480_v10 = vld [vmem:[%s2299_s1 + $0x28] sm:$0xff]  }
  0xf8   :  { %v309_v1 = vmul.f32 %v1784_v57, %v1784_v57  ;;  %1425 = vmatmul.mubr.msk.bf16.gmra.mrb[8].mxu1 %vm1040_vm2, %v1480_v10 }
  0xf9   :  { %v307_v63 = vmul.f32 %v1795_v60, %v1795_v60 }
  0xfa   :  { %324 = vadd.xlane.f32.xlu1 %v301_v42 }
  0xfb   :  { %322 = vadd.xlane.f32.xlu0 %v300_v44 }
  0xfe   :  { %268 = vadd.xlane.f32.xlu1 %v1748_v45 }
  0xff   :  { %266 = vadd.xlane.f32.xlu0 %v1754_v47 }
 0x102   :  { %264 = vadd.xlane.f32.xlu1 %v1759_v48 }
 0x103   :  { %262 = vadd.xlane.f32.xlu0 %v1765_v50 }
 0x106   :  { %328 = vadd.xlane.f32.xlu1 %v303_v51 }
 0x107   :  { %326 = vadd.xlane.f32.xlu0 %v302_v53 }
 0x10a   :  { %332 = vadd.xlane.f32.xlu1 %v305_v54 }
 0x10b   :  { %330 = vadd.xlane.f32.xlu0 %v304_v56 }
 0x10e   :  { %276 = vadd.xlane.f32.xlu1 %v1784_v57 }
 0x10f   :  { %274 = vadd.xlane.f32.xlu0 %v1790_v59 }
 0x112   :  { %272 = vadd.xlane.f32.xlu1 %v1795_v60 }
 0x113   :  { %270 = vadd.xlane.f32.xlu0 %v1801_v62 }
 0x116   :  { %336 = vadd.xlane.f32.xlu1 %v307_v63 }
 0x117   :  { %334 = vadd.xlane.f32.xlu0 %v306_v0 }
 0x11a   :  { %340 = vadd.xlane.f32.xlu1 %v309_v1 }
 0x11b   :  { %338 = vadd.xlane.f32.xlu0 %v308_v2 }
 0x16b   :  { %v251_v11 = vpop.xlane.xlu1 %250 }
 0x16c   :  { %v247_v13 = vpop.xlane.xlu0 %246  ;;  %v1842_v26 = vmul.f32 0.0078125, %v251_v11 }
 0x16d   :  { %v278_v19 = vmul.f32 0.0078125, %v247_v13 }
 0x16e   :  { %v360_v40 = vmul.f32 %v1842_v26, %v1842_v26 }
 0x16f   :  { %v253_v15 = vpop.xlane.xlu1 %252  ;;  %v358_v28 = vmul.f32 %v278_v19, %v278_v19  ;;  %v406_v11 = vsub.f32 %v1697_v14, %v278_v19  ;;  %v1874_v14 = vld [vmem:[%s2303_s5] ss:$0 sm:$0xff] }
 0x170   :  { %v249_v16 = vpop.xlane.xlu0 %248  ;;  %v1840_v23 = vmul.f32 0.0078125, %v253_v15  ;;  %v1865_v15 = vld [vmem:[%s2302_s4] ss:$0 sm:$0xff] }
 0x171   :  { %v279_v20 = vmul.f32 0.0078125, %v249_v16 }
 0x172   :  { %v361_v36 = vmul.f32 %v1840_v23, %v1840_v23 }
 0x173   :  { %v359_v21 = vmul.f32 %v279_v20, %v279_v20  ;;  %v313_v22 = vpop.xlane.xlu1 %312  ;;  %v407_v6 = vsub.f32 %v1705_v18, %v279_v20 }
 0x174   :  { %v343_v24 = vmul.f32 0.0078125, %v313_v22  ;;  %v311_v25 = vpop.xlane.xlu0 %310 }
 0x175   :  { %v342_v29 = vmul.f32 0.0078125, %v311_v25 }
 0x176   :  { %v375_v31 = vsub.f32 %v343_v24, %v359_v21  ;;  %v408_v21 = vsub.f32 %v1694_v12, %v1842_v26 }
 0x177   :  { %v374_v32 = vsub.f32 %v342_v29, %v358_v28  ;;  %v317_v35 = vpop.xlane.xlu1 %316 }
 0x178   :  { %v391_v37 = vmax.f32 %v375_v31, 0.0  ;;  %v345_v38 = vmul.f32 0.0078125, %v317_v35  ;;  %v315_v39 = vpop.xlane.xlu0 %314 }
 0x179   :  { %v390_v41 = vmax.f32 %v374_v32, 0.0  ;;  %v344_v42 = vmul.f32 0.0078125, %v315_v39 }
 0x17a   :  { %v423_v43 = vadd.f32 1e-05, %v391_v37  ;;  %v377_v44 = vsub.f32 %v345_v38, %v361_v36  ;;  %v409_v36 = vsub.f32 %v1702_v17, %v1840_v23 }
 0x17b   :  { %v422_v46 = vadd.f32 1e-05, %v390_v41  ;;  %v376_v49 = vsub.f32 %v344_v42, %v360_v40  ;;  %v261_v51 = vpop.xlane.xlu1 %260 }
 0x17c   :  { %1483 = vrsqrt.f32 %v423_v43  ;;  %v393_v52 = vmax.f32 %v377_v44, 0.0  ;;  %v259_v53 = vpop.xlane.xlu0 %258  ;;  %v1852_v2 = vmul.f32 0.0078125, %v261_v51 }
 0x17d   :  { %1485 = vrsqrt.f32 %v422_v46  ;;  %v392_v54 = vmax.f32 %v376_v49, 0.0  ;;  %v1857_v7 = vmul.f32 0.0078125, %v259_v53 }
 0x17e   :  { %v425_v55 = vadd.f32 1e-05, %v393_v52  ;;  %v365_v24 = vmul.f32 %v1852_v2, %v1852_v2 }
 0x17f   :  { %v424_v56 = vadd.f32 1e-05, %v392_v54  ;;  %v257_v58 = vpop.xlane.xlu1 %256  ;;  %v364_v31 = vmul.f32 %v1857_v7, %v1857_v7 }
 0x180   :  { %1487 = vrsqrt.f32 %v425_v55  ;;  %v1848_v61 = vmul.f32 0.0078125, %v257_v58  ;;  %v255_v63 = vpop.xlane.xlu0 %254 }
 0x181   :  { %1489 = vrsqrt.f32 %v424_v56  ;;  %v1850_v0 = vmul.f32 0.0078125, %v255_v63 }
 0x182   :  { %v363_v3 = vmul.f32 %v1848_v61, %v1848_v61 }
 0x183   :  { %v321_v1 = vpop.xlane.xlu1 %320  ;;  %v362_v8 = vmul.f32 %v1850_v0, %v1850_v0 }
 0x184   :  { %v347_v4 = vmul.f32 0.0078125, %v321_v1  ;;  %v319_v5 = vpop.xlane.xlu0 %318 }
 0x185   :  { %v346_v9 = vmul.f32 0.0078125, %v319_v5 }
 0x186   :  { %v1484_v10 = vpop.eup %1483  ;;  %v379_v13 = vsub.f32 %v347_v4, %v363_v3 }
 0x187   :  { %v1486_v16 = vpop.eup %1485  ;;  %v378_v18 = vsub.f32 %v346_v9, %v362_v8  ;;  %v325_v20 = vpop.xlane.xlu1 %324  ;;  %v455_v22 = vmul.f32 %v1484_v10, %v407_v6 }
 0x188   :  { %v395_v25 = vmax.f32 %v379_v13, 0.0  ;;  %v349_v28 = vmul.f32 0.0078125, %v325_v20  ;;  %v323_v29 = vpop.xlane.xlu0 %322  ;;  %v454_v19 = vmul.f32 %v1486_v16, %v406_v11 }
 0x189   :  { %v394_v32 = vmax.f32 %v378_v18, 0.0  ;;  %v348_v12 = vmul.f32 0.0078125, %v323_v29  ;;  %v477_v26 = vmul.f32 %v1865_v15, %v455_v22  ;;  %v411_v22 = vsub.f32 %v1726_v33, %v1848_v61 }
 0x18a   :  { %v1488_v35 = vpop.eup %1487  ;;  %v427_v37 = vadd.f32 1e-05, %v395_v25  ;;  %v381_v38 = vsub.f32 %v349_v28, %v365_v24  ;;  %v476_v39 = vmul.f32 %v1865_v15, %v454_v19  ;;  %v410_v19 = vsub.f32 %v1729_v34, %v1850_v0 }
 0x18b   :  { %v1490_v40 = vpop.eup %1489  ;;  %v426_v41 = vadd.f32 1e-05, %v394_v32  ;;  %v380_v42 = vsub.f32 %v348_v12, %v364_v31  ;;  %v269_v43 = vpop.xlane.xlu1 %268  ;;  %v499_v44 = vadd.f32 %v1874_v14, %v477_v26  ;;  %v457_v46 = vmul.f32 %v1488_v35, %v409_v36 }
 0x18c   :  { %v456_v49 = vmul.f32 %v1490_v40, %v408_v21  ;;  %1491 = vrsqrt.f32 %v427_v37  ;;  %v397_v51 = vmax.f32 %v381_v38, 0.0  ;;  %v267_v52 = vpop.xlane.xlu0 %266  ;;  %v498_v54 = vadd.f32 %v1874_v14, %v476_v39 }
 0x18d   :  { %1493 = vrsqrt.f32 %v426_v41  ;;  %v396_v53 = vmax.f32 %v380_v42, 0.0  ;;  %v515_v23 = vmax.f32 %v499_v44, 0.0  ;;  %v479_v4 = vmul.f32 %v1865_v15, %v457_v46 }
 0x18e   :  { %v429_v17 = vadd.f32 1e-05, %v397_v51  ;;  %v514_v58 = vmax.f32 %v498_v54, 0.0  ;;  %v478_v3 = vmul.f32 %v1865_v15, %v456_v49  ;;  %v1892_v10 = vmul.f32 0.0078125, %v269_v43 }
 0x18f   :  { %v428_v55 = vadd.f32 1e-05, %v396_v53  ;;  %v265_v56 = vpop.xlane.xlu1 %264  ;;  %v501_v9 = vadd.f32 %v1874_v14, %v479_v4  ;;  %v1898_v24 = vmul.f32 0.0078125, %v267_v52  ;;  %v413_v43 = vsub.f32 %v1718_v27, %v1852_v2 }
 0x190   :  { %1495 = vrsqrt.f32 %v429_v17  ;;  %v1884_v63 = vmul.f32 0.0078125, %v265_v56  ;;  %v263_v1 = vpop.xlane.xlu0 %262  ;;  %v530_v6 = vpack.c.bf16 %v515_v23, %v514_v58  ;;  %v500_v8 = vadd.f32 %v1874_v14, %v478_v3 }
 0x191   :  { %v1888_v5 = vmul.f32 0.0078125, %v263_v1  ;;  %1497 = vrsqrt.f32 %v428_v55  ;;  %v517_v20 = vmax.f32 %v501_v9, 0.0  ;;  %v369_v37 = vmul.f32 %v1892_v10, %v1892_v10 }
 0x192   :  { %1398 = vmatprep.mubr.bf16.mxu0 %v530_v6  ;;  %v367_v13 = vmul.f32 %v1884_v63, %v1884_v63  ;;  %v516_v18 = vmax.f32 %v500_v8, 0.0  ;;  %v368_v40 = vmul.f32 %v1898_v24, %v1898_v24  ;;  %v412_v1 = vsub.f32 %v1721_v30, %v1857_v7 }
 0x193   :  { %v329_v11 = vpop.xlane.xlu1 %328  ;;  %v366_v25 = vmul.f32 %v1888_v5, %v1888_v5 }
 0x194   :  { %v351_v16 = vmul.f32 0.0078125, %v329_v11  ;;  %v327_v21 = vpop.xlane.xlu0 %326  ;;  %v531_v32 = vpack.c.bf16 %v517_v20, %v516_v18  ;;  %v415_v20 = vsub.f32 %v1759_v48, %v1884_v63  ;;  %v414_v48 = vsub.f32 %v1765_v50, %v1888_v5 }
 0x195   :  { %v350_v28 = vmul.f32 0.0078125, %v327_v21 }
 0x196   :  { %v1492_v29 = vpop.eup %1491  ;;  %v383_v31 = vsub.f32 %v351_v16, %v367_v13  ;;  %1399 = vmatmul.mubr.bf16.vlgmr.msra.gmra.mrb[16].mxu0 %v531_v32 }
 0x197   :  { %v1494_v12 = vpop.eup %1493  ;;  %v382_v26 = vsub.f32 %v350_v28, %v366_v25  ;;  %v333_v35 = vpop.xlane.xlu1 %332  ;;  %v459_v36 = vmul.f32 %v1492_v29, %v411_v22 }
 0x198   :  { %v399_v33 = vmax.f32 %v383_v31, 0.0  ;;  %v353_v61 = vmul.f32 0.0078125, %v333_v35  ;;  %v331_v38 = vpop.xlane.xlu0 %330  ;;  %v458_v39 = vmul.f32 %v1494_v12, %v410_v19 }
 0x199   :  { %v398_v41 = vmax.f32 %v382_v26, 0.0  ;;  %v352_v42 = vmul.f32 0.0078125, %v331_v38  ;;  %v481_v34 = vmul.f32 %v1865_v15, %v459_v36 }
 0x19a   :  { %v1496_v0 = vpop.eup %1495  ;;  %v431_v44 = vadd.f32 1e-05, %v399_v33  ;;  %v385_v46 = vsub.f32 %v353_v61, %v369_v37  ;;  %v480_v49 = vmul.f32 %v1865_v15, %v458_v39  ;;  %v417_v61 = vsub.f32 %v1748_v45, %v1892_v10 }
 0x19b   :  { %v430_v51 = vadd.f32 1e-05, %v398_v41  ;;  %v384_v52 = vsub.f32 %v352_v42, %v368_v40  ;;  %v277_v53 = vpop.xlane.xlu1 %276  ;;  %v503_v54 = vadd.f32 %v1874_v14, %v481_v34  ;;  %v1498_v17 = vpop.eup %1497  ;;  %v461_v58 = vmul.f32 %v1496_v0, %v413_v43 }
 0x19c   :  { %1499 = vrsqrt.f32 %v431_v44  ;;  %v401_v23 = vmax.f32 %v385_v46, 0.0  ;;  %v275_v55 = vpop.xlane.xlu0 %274  ;;  %v502_v56 = vadd.f32 %v1874_v14, %v480_v49  ;;  %v460_v9 = vmul.f32 %v1498_v17, %v412_v1 }
 0x19d   :  { %1501 = vrsqrt.f32 %v430_v51  ;;  %v400_v27 = vmax.f32 %v384_v52, 0.0  ;;  %v519_v2 = vmax.f32 %v503_v54, 0.0  ;;  %v483_v21 = vmul.f32 %v1865_v15, %v461_v58 }
 0x19e   :  { %v433_v3 = vadd.f32 1e-05, %v401_v23  ;;  %v518_v4 = vmax.f32 %v502_v56, 0.0  ;;  %v482_v30 = vmul.f32 %v1865_v15, %v460_v9  ;;  %v1926_v28 = vmul.f32 0.0078125, %v277_v53 }
 0x19f   :  { %v432_v6 = vadd.f32 1e-05, %v400_v27  ;;  %v273_v8 = vpop.xlane.xlu1 %272  ;;  %v505_v7 = vadd.f32 %v1874_v14, %v483_v21  ;;  %v1930_v12 = vmul.f32 0.0078125, %v275_v55  ;;  %v416_v10 = vsub.f32 %v1754_v47, %v1898_v24 }
 0x1a0   :  { %1503 = vrsqrt.f32 %v433_v3  ;;  %v1916_v11 = vmul.f32 0.0078125, %v273_v8  ;;  %v271_v13 = vpop.xlane.xlu0 %270  ;;  %v532_v16 = vpack.c.bf16 %v519_v2, %v518_v4  ;;  %v504_v25 = vadd.f32 %v1874_v14, %v482_v30 }
 0x1a1   :  { %1505 = vrsqrt.f32 %v432_v6  ;;  %v1919_v18 = vmul.f32 0.0078125, %v271_v13  ;;  %v521_v32 = vmax.f32 %v505_v7, 0.0  ;;  %v373_v42 = vmul.f32 %v1926_v28, %v1926_v28 }
 0x1a2   :  { %1402 = vmatprep.mubr.bf16.mxu0 %v532_v16  ;;  %v371_v29 = vmul.f32 %v1916_v11, %v1916_v11  ;;  %v520_v36 = vmax.f32 %v504_v25, 0.0  ;;  %v372_v46 = vmul.f32 %v1930_v12, %v1930_v12 }
 0x1a3   :  { %v337_v22 = vpop.xlane.xlu1 %336  ;;  %v370_v26 = vmul.f32 %v1919_v18, %v1919_v18  ;;  %v418_v25 = vsub.f32 %v1801_v62, %v1919_v18 }
 0x1a4   :  { %v355_v19 = vmul.f32 0.0078125, %v337_v22  ;;  %v335_v31 = vpop.xlane.xlu0 %334  ;;  %v533_v39 = vpack.c.bf16 %v521_v32, %v520_v36  ;;  %v421_v32 = vsub.f32 %v1784_v57, %v1926_v28  ;;  %v420_v36 = vsub.f32 %v1790_v59, %v1930_v12 }
 0x1a5   :  { %v354_v35 = vmul.f32 0.0078125, %v335_v31 }
 0x1a6   :  { %v1500_v37 = vpop.eup %1499  ;;  %v387_v63 = vsub.f32 %v355_v19, %v371_v29  ;;  %1403 = vmatmul.mubr.bf16.gmra.mrb[20].mxu0 %v533_v39 }
 0x1a7   :  { %v1502_v33 = vpop.eup %1501  ;;  %v386_v38 = vsub.f32 %v354_v35, %v370_v26  ;;  %v341_v40 = vpop.xlane.xlu1 %340  ;;  %v463_v41 = vmul.f32 %v1500_v37, %v415_v20  ;;  %v419_v20 = vsub.f32 %v1795_v60, %v1916_v11 }
 0x1a8   :  { %v403_v34 = vmax.f32 %v387_v63, 0.0  ;;  %v357_v0 = vmul.f32 0.0078125, %v341_v40  ;;  %v339_v43 = vpop.xlane.xlu0 %338  ;;  %v462_v44 = vmul.f32 %v1502_v33, %v414_v48 }
 0x1a9   :  { %v402_v50 = vmax.f32 %v386_v38, 0.0  ;;  %v356_v5 = vmul.f32 0.0078125, %v339_v43  ;;  %v485_v49 = vmul.f32 %v1865_v15, %v463_v41  ;;  %v1481_v41 = vld [vmem:[%s2299_s1 + $0x30] sm:$0xff]  }
 0x1aa   :  { %v1504_v45 = vpop.eup %1503  ;;  %v435_v51 = vadd.f32 1e-05, %v403_v34  ;;  %v389_v52 = vsub.f32 %v357_v0, %v373_v42  ;;  %v484_v53 = vmul.f32 %v1865_v15, %v462_v44  ;;  %v1482_v42 = vld [vmem:[%s2299_s1 + $0x38] sm:$0xff]   ;;  %1428 = vmatprep.mubr.msk.bf16.mxu1 %vm1040_vm2, %v1481_v41 }
 0x1ab   :  { %v1506_v54 = vpop.eup %1505  ;;  %v434_v17 = vadd.f32 1e-05, %v402_v50  ;;  %v388_v23 = vsub.f32 %v356_v5, %v372_v46  ;;  %v507_v55 = vadd.f32 %v1874_v14, %v485_v49  ;;  %v465_v56 = vmul.f32 %v1504_v45, %v417_v61  ;;  %1429 = vmatmul.mubr.msk.bf16.gmra.mrb[12].mxu1 %vm1040_vm2, %v1482_v42 }
 0x1ac   :  { %1507 = vrsqrt.f32 %v435_v51  ;;  %v405_v58 = vmax.f32 %v389_v52, 0.0  ;;  %v506_v1 = vadd.f32 %v1874_v14, %v484_v53  ;;  %v464_v27 = vmul.f32 %v1506_v54, %v416_v10 }
 0x1ad   :  { %1509 = vrsqrt.f32 %v434_v17  ;;  %v404_v2 = vmax.f32 %v388_v23, 0.0  ;;  %v523_v3 = vmax.f32 %v507_v55, 0.0  ;;  %v487_v47 = vmul.f32 %v1865_v15, %v465_v56 }
 0x1ae   :  { %v437_v24 = vadd.f32 1e-05, %v405_v58  ;;  %v522_v4 = vmax.f32 %v506_v1, 0.0  ;;  %v486_v6 = vmul.f32 %v1865_v15, %v464_v27 }
 0x1af   :  { %v436_v8 = vadd.f32 1e-05, %v404_v2  ;;  %v509_v9 = vadd.f32 %v1874_v14, %v487_v47 }
 0x1b0   :  { %1511 = vrsqrt.f32 %v437_v24  ;;  %v534_v13 = vpack.c.bf16 %v523_v3, %v522_v4  ;;  %v508_v16 = vadd.f32 %v1874_v14, %v486_v6 }
 0x1b1   :  { %1513 = vrsqrt.f32 %v436_v8  ;;  %v525_v21 = vmax.f32 %v509_v9, 0.0 }
 0x1b2   :  { %1406 = vmatprep.mubr.bf16.mxu0 %v534_v13  ;;  %v524_v30 = vmax.f32 %v508_v16, 0.0 }
 0x1b4   :  { %v535_v7 = vpack.c.bf16 %v525_v21, %v524_v30  ;;  %v2041_v21 = vpop.f32.mrb[0].mxu1 }
 0x1b5   :  { %v2043_v30 = vpop.f32.mrb[1].mxu1 }
 0x1b6   :  { %v1508_v22 = vpop.eup %1507  ;;  %1407 = vmatmul.mubr.bf16.gmra.mrb[24].mxu0 %v535_v7 }
 0x1b7   :  { %v1510_v29 = vpop.eup %1509  ;;  %v467_v19 = vmul.f32 %v1508_v22, %v419_v20  ;;  %v2048_v20 = vpop.f32.mrb[2].mxu1 }
 0x1b8   :  { %v466_v31 = vmul.f32 %v1510_v29, %v418_v25  ;;  %v2054_v25 = vpop.f32.mrb[3].mxu1 }
 0x1b9   :  { %v489_v26 = vmul.f32 %v1865_v15, %v467_v19 }
 0x1ba   :  { %v1512_v35 = vpop.eup %1511  ;;  %v488_v37 = vmul.f32 %v1865_v15, %v466_v31 }
 0x1bb   :  { %v1514_v60 = vpop.eup %1513  ;;  %v511_v11 = vadd.f32 %v1874_v14, %v489_v26  ;;  %v469_v48 = vmul.f32 %v1512_v35, %v421_v32 }
 0x1bc   :  { %v510_v62 = vadd.f32 %v1874_v14, %v488_v37  ;;  %v468_v18 = vmul.f32 %v1514_v60, %v420_v36 }
 0x1bd   :  { %v527_v63 = vmax.f32 %v511_v11, 0.0  ;;  %v491_v33 = vmul.f32 %v1865_v15, %v469_v48  ;;  %v1571_v11 = vmov 0.0  }
 0x1be   :  { %v526_v61 = vmax.f32 %v510_v62, 0.0  ;;  %v490_v57 = vmul.f32 %v1865_v15, %v468_v18  ;;  %v1979_v15 = vld [vmem:[%s2305_s7] ss:$0 sm:$0xff]  ;;  %1432 = vmatprep.subr.bf16.mxu1 %v1571_v11  ;;  %v2074_v62 = vpop.f32.mrb[4].mxu1  ;;  %1448 = vmatprep.mubr.msk.bf16.mxu1 %vm1572_vm3, %v1571_v11 }
 0x1bf   :  { %v513_v28 = vadd.f32 %v1874_v14, %v491_v33 }
 0x1c0   :  { %v536_v38 = vpack.c.bf16 %v527_v63, %v526_v61  ;;  %v512_v59 = vadd.f32 %v1874_v14, %v490_v57  ;;  %v2079_v63 = vpop.f32.mrb[5].mxu1 }
 0x1c1   :  { %v529_v12 = vmax.f32 %v513_v28, 0.0  ;;  %v2081_v33 = vpop.f32.mrb[6].mxu1 }
 0x1c2   :  { %1410 = vmatprep.mubr.bf16.mxu0 %v536_v38  ;;  %v528_v39 = vmax.f32 %v512_v59, 0.0  ;;  %v2087_v57 = vpop.f32.mrb[7].mxu1 }
 0x1c4   :  { %v537_v40 = vpack.c.bf16 %v529_v12, %v528_v39 }
 0x1c6   :  { %1411 = vmatmul.mubr.bf16.gmra.mrb[28].mxu0 %v537_v40 }
 0x1cb   :  { %v2094_v59 = vpop.f32.mrb[8].mxu1 }
 0x1cc   :  { %v2096_v12 = vpop.f32.mrb[9].mxu1 }
 0x1cd   :  { %v2098_v39 = vpop.f32.mrb[10].mxu1 }
 0x1ce   :  { %v2100_v40 = vpop.f32.mrb[11].mxu1 }
 0x269   :  { %v1400_v14 = vpop.f32.mrb[16].mxu0 }
 0x26a   :  { %v643_v34 = vpop.f32.mrb[17].mxu0  ;;  %v1994_v49 = vadd.f32 %v1400_v14, %v1979_v15 }
 0x26b   :  { %v1982_v0 = vadd.f32 %v1979_v15, %v643_v34  ;;  %v1401_v43 = vpop.f32.mrb[18].mxu0  ;;  %v1247_v34 = vld [vmem:[#allocation2] sm:$0x1] }
 0x26c   :  { %v646_v44 = vpop.f32.mrb[19].mxu0  ;;  %v1997_v45 = vadd.f32 %v1401_v43, %v1979_v15  ;;  %v758_v10 = vmul.f32 %v1994_v49, %v1994_v49  ;;  %v1573_v43 = vmov 0  }
 0x26d   :  { %v1985_v46 = vadd.f32 %v1979_v15, %v646_v44  ;;  %708 = vadd.xlane.f32.xlu0 %v1982_v0  ;;  %v756_v50 = vmul.f32 %v1982_v0, %v1982_v0 }
 0x26e   :  { %v759_v51 = vmul.f32 %v1997_v45, %v1997_v45  ;;  %1457 = vset.pattern.permute.xlu0 %v1573_v43 }
 0x26f   :  { %710 = vadd.xlane.f32.xlu1 %v1985_v46  ;;  %v757_v5 = vmul.f32 %v1985_v46, %v1985_v46 }
 0x271   :  { %772 = vadd.xlane.f32.xlu0 %v756_v50 }
 0x273   :  { %774 = vadd.xlane.f32.xlu1 %v757_v5 }
 0x275   :  { %712 = vadd.xlane.f32.xlu0 %v1994_v49 }
 0x277   :  { %714 = vadd.xlane.f32.xlu1 %v1997_v45 }
 0x279   :  { %776 = vadd.xlane.f32.xlu0 %v758_v10  ;;  %v1404_v52 = vpop.f32.mrb[20].mxu0 }
 0x27a   :  { %v659_v53 = vpop.f32.mrb[21].mxu0  ;;  %v2018_v1 = vadd.f32 %v1404_v52, %v1979_v15 }
 0x27b   :  { %778 = vadd.xlane.f32.xlu1 %v759_v51  ;;  %v2006_v54 = vadd.f32 %v1979_v15, %v659_v53  ;;  %v1405_v17 = vpop.f32.mrb[22].mxu0 }
 0x27c   :  { %v662_v23 = vpop.f32.mrb[23].mxu0  ;;  %v2021_v27 = vadd.f32 %v1405_v17, %v1979_v15  ;;  %v762_v3 = vmul.f32 %v2018_v1, %v2018_v1 }
 0x27d   :  { %v2009_v55 = vadd.f32 %v1979_v15, %v662_v23  ;;  %716 = vadd.xlane.f32.xlu0 %v2006_v54  ;;  %v760_v56 = vmul.f32 %v2006_v54, %v2006_v54 }
 0x27e   :  { %v763_v6 = vmul.f32 %v2021_v27, %v2021_v27  ;;  %v2102_v41 = vpop.f32.mrb[12].mxu1 }
 0x27f   :  { %718 = vadd.xlane.f32.xlu1 %v2009_v55  ;;  %v761_v58 = vmul.f32 %v2009_v55, %v2009_v55  ;;  %v2104_v42 = vpop.f32.mrb[13].mxu1 }
 0x281   :  { %780 = vadd.xlane.f32.xlu0 %v760_v56 }
 0x283   :  { %782 = vadd.xlane.f32.xlu1 %v761_v58 }
 0x285   :  { %720 = vadd.xlane.f32.xlu0 %v2018_v1 }
 0x287   :  { %722 = vadd.xlane.f32.xlu1 %v2021_v27 }
 0x289   :  { %v1408_v2 = vpop.f32.mrb[24].mxu0  ;;  %784 = vadd.xlane.f32.xlu0 %v762_v3 }
 0x28a   :  { %v675_v47 = vpop.f32.mrb[25].mxu0  ;;  %v2046_v7 = vadd.f32 %v1408_v2, %v1979_v15 }
 0x28b   :  { %v1409_v24 = vpop.f32.mrb[26].mxu0  ;;  %v2028_v4 = vadd.f32 %v1979_v15, %v675_v47  ;;  %786 = vadd.xlane.f32.xlu1 %v763_v6 }
 0x28c   :  { %v678_v8 = vpop.f32.mrb[27].mxu0  ;;  %v2051_v22 = vadd.f32 %v1409_v24, %v1979_v15  ;;  %v766_v19 = vmul.f32 %v2046_v7, %v2046_v7 }
 0x28d   :  { %v2033_v9 = vadd.f32 %v1979_v15, %v678_v8  ;;  %724 = vadd.xlane.f32.xlu0 %v2028_v4  ;;  %v764_v13 = vmul.f32 %v2028_v4, %v2028_v4 }
 0x28e   :  { %v767_v35 = vmul.f32 %v2051_v22, %v2051_v22 }
 0x28f   :  { %726 = vadd.xlane.f32.xlu1 %v2033_v9  ;;  %v765_v16 = vmul.f32 %v2033_v9, %v2033_v9 }
 0x291   :  { %788 = vadd.xlane.f32.xlu0 %v764_v13 }
 0x293   :  { %790 = vadd.xlane.f32.xlu1 %v765_v16 }
 0x295   :  { %728 = vadd.xlane.f32.xlu0 %v2046_v7 }
 0x297   :  { %730 = vadd.xlane.f32.xlu1 %v2051_v22 }
 0x299   :  { %v1412_v29 = vpop.f32.mrb[28].mxu0  ;;  %792 = vadd.xlane.f32.xlu0 %v766_v19 }
 0x29a   :  { %v691_v31 = vpop.f32.mrb[29].mxu0  ;;  %v2077_v18 = vadd.f32 %v1412_v29, %v1979_v15 }
 0x29b   :  { %v1413_v32 = vpop.f32.mrb[30].mxu0  ;;  %v2060_v26 = vadd.f32 %v1979_v15, %v691_v31  ;;  %794 = vadd.xlane.f32.xlu1 %v767_v35 }
 0x29c   :  { %v694_v36 = vpop.f32.mrb[31].mxu0  ;;  %v2084_v61 = vadd.f32 %v1413_v32, %v1979_v15  ;;  %v770_v28 = vmul.f32 %v2077_v18, %v2077_v18 }
 0x29d   :  { %v2065_v37 = vadd.f32 %v1979_v15, %v694_v36  ;;  %732 = vadd.xlane.f32.xlu0 %v2060_v26  ;;  %v768_v60 = vmul.f32 %v2060_v26, %v2060_v26  ;;  %v2106_v15 = vpop.f32.mrb[14].mxu1 }
 0x29e   :  { %v771_v38 = vmul.f32 %v2084_v61, %v2084_v61  ;;  %v2108_v14 = vpop.f32.mrb[15].mxu1 }
 0x29f   :  { %734 = vadd.xlane.f32.xlu1 %v2065_v37  ;;  %v769_v48 = vmul.f32 %v2065_v37, %v2065_v37 }
 0x2a1   :  { %796 = vadd.xlane.f32.xlu0 %v768_v60 }
 0x2a3   :  { %798 = vadd.xlane.f32.xlu1 %v769_v48 }
 0x2a5   :  { %736 = vadd.xlane.f32.xlu0 %v2077_v18 }
 0x2a7   :  { %738 = vadd.xlane.f32.xlu1 %v2084_v61 }
 0x2a9   :  { %800 = vadd.xlane.f32.xlu0 %v770_v28 }
 0x2ab   :  { %802 = vadd.xlane.f32.xlu1 %v771_v38 }
 0x2bf   :  { %1250 = vperm.xlu0 %1457, %v1247_v34  }
 0x2fa   :  { %v709_v44 = vpop.xlane.xlu0 %708 }
 0x2fb   :  { %v740_v50 = vmul.f32 0.0078125, %v709_v44 }
 0x2fc   :  { %v711_v5 = vpop.xlane.xlu1 %710 }
 0x2fd   :  { %v741_v10 = vmul.f32 0.0078125, %v711_v5  ;;  %v820_v52 = vmul.f32 %v740_v50, %v740_v50 }
 0x2fe   :  { %v773_v51 = vpop.xlane.xlu0 %772 }
 0x2ff   :  { %v804_v53 = vmul.f32 0.0078125, %v773_v51  ;;  %v821_v23 = vmul.f32 %v741_v10, %v741_v10 }
 0x300   :  { %v775_v17 = vpop.xlane.xlu1 %774 }
 0x301   :  { %v836_v56 = vsub.f32 %v804_v53, %v820_v52  ;;  %v805_v58 = vmul.f32 0.0078125, %v775_v17 }
 0x302   :  { %v713_v2 = vpop.xlane.xlu0 %712 }
 0x303   :  { %v852_v3 = vmax.f32 %v836_v56, 0.0  ;;  %v837_v47 = vsub.f32 %v805_v58, %v821_v23  ;;  %v2111_v24 = vmul.f32 0.0078125, %v713_v2  ;;  %v868_v23 = vsub.f32 %v1982_v0, %v740_v50  ;;  %v2136_v0 = vld [vmem:[%s2309_s11] ss:$0 sm:$0xff]  ;;  %s1574_s11 = smov [#allocation3]  }
 0x304   :  { %v715_v6 = vpop.xlane.xlu1 %714  ;;  %s1265_s16 = sshll.u32 %s1574_s11, 4  ;;  %s1266_s16 = int_to_ptr.vmem [resolvable:$true] %s1265_s16 }
 0x305   :  { %v884_v8 = vadd.f32 1e-05, %v852_v3  ;;  %v853_v13 = vmax.f32 %v837_v47, 0.0  ;;  %v2113_v16 = vmul.f32 0.0078125, %v715_v6  ;;  %v822_v31 = vmul.f32 %v2111_v24, %v2111_v24  ;;  %v2129_v47 = vld [vmem:[%s2306_s8] ss:$0 sm:$0xff]  ;;  %p1552_p1 = scmp.lt.s32.totalorder %s1266_s16, %s1266_s16 }
 0x306   :  { %v777_v29 = vpop.xlane.xlu0 %776  ;;  %s1547_s0 = scalar_lea.vmem %s1266_s16, 16  ;;  %s1551_s3 = scalar_lea.vmem %s1266_s16, 32 }
 0x307   :  { %1515 = vrsqrt.f32 %v884_v8  ;;  %v885_v19 = vadd.f32 1e-05, %v853_v13  ;;  %v806_v32 = vmul.f32 0.0078125, %v777_v29  ;;  %v823_v36 = vmul.f32 %v2113_v16, %v2113_v16  ;;  %p1548_p0 = scmp.ne.s32.totalorder %s1266_s16, %s1547_s0  ;;  %p1553_p2 = scmp.lt.s32.totalorder %s1551_s3, %s1547_s0 }
 0x308   :  { %v779_v35 = vpop.xlane.xlu1 %778 }
 0x309   :  { %1517 = vrsqrt.f32 %v885_v19  ;;  %v838_v60 = vsub.f32 %v806_v32, %v822_v31  ;;  %v807_v48 = vmul.f32 0.0078125, %v779_v35  ;;  %v869_v19 = vsub.f32 %v1985_v46, %v741_v10  ;;  %v2142_v31 = vld [vmem:[%s2307_s9] ss:$0 sm:$0xff]  ;;  %p1554_p3 = por %p1553_p2, %p1552_p1 }
 0x30a   :  { %v717_v34 = vpop.xlane.xlu0 %716  ;;  %v870_v10 = vsub.f32 %v1994_v49, %v2111_v24  ;;  %v871_v49 = vsub.f32 %v1997_v45, %v2113_v16 }
 0x30b   :  { %v854_v28 = vmax.f32 %v838_v60, 0.0  ;;  %v839_v38 = vsub.f32 %v807_v48, %v823_v36  ;;  %v2119_v43 = vmul.f32 0.0078125, %v717_v34  ;;  %p1555_p4 = pnand %p1554_p3, %p1548_p0 }
 0x30c   :  { %v719_v51 = vpop.xlane.xlu1 %718 }
 0x30d   :  { %v886_v44 = vadd.f32 1e-05, %v854_v28  ;;  %v855_v5 = vmax.f32 %v839_v38, 0.0  ;;  %v2121_v52 = vmul.f32 0.0078125, %v719_v51  ;;  %v824_v56 = vmul.f32 %v2119_v43, %v2119_v43 }
 0x30e   :  { %v781_v17 = vpop.xlane.xlu0 %780  ;;  %v1104_v28 = vadd.f32 %v2136_v0, %v2043_v30 }
 0x30f   :  { %1519 = vrsqrt.f32 %v886_v44  ;;  %v887_v53 = vadd.f32 1e-05, %v855_v5  ;;  %v808_v58 = vmul.f32 0.0078125, %v781_v17  ;;  %v825_v6 = vmul.f32 %v2121_v52, %v2121_v52 }
 0x310   :  { %v783_v3 = vpop.xlane.xlu1 %782 }
 0x311   :  { %v1516_v2 = vpop.eup %1515  ;;  %1521 = vrsqrt.f32 %v887_v53  ;;  %v840_v8 = vsub.f32 %v808_v58, %v824_v56  ;;  %v809_v13 = vmul.f32 0.0078125, %v783_v3 }
 0x312   :  { %v916_v50 = vmul.f32 %v1516_v2, %v868_v23  ;;  %v721_v32 = vpop.xlane.xlu0 %720 }
 0x313   :  { %v1518_v29 = vpop.eup %1517  ;;  %v856_v35 = vmax.f32 %v840_v8, 0.0  ;;  %v841_v36 = vsub.f32 %v809_v13, %v825_v6  ;;  %v2145_v48 = vmul.f32 0.0078125, %v721_v32  ;;  %v1107_v6 = vadd.f32 %v2136_v0, %v2054_v25 }
 0x314   :  { %v938_v60 = vmul.f32 %v2129_v47, %v916_v50  ;;  %v917_v38 = vmul.f32 %v1518_v29, %v869_v19  ;;  %v723_v34 = vpop.xlane.xlu1 %722  ;;  %v1112_v25 = vadd.f32 %v2041_v21, %v2136_v0 }
 0x315   :  { %v888_v44 = vadd.f32 1e-05, %v856_v35  ;;  %v857_v5 = vmax.f32 %v841_v36, 0.0  ;;  %v2153_v53 = vmul.f32 0.0078125, %v723_v34  ;;  %v826_v56 = vmul.f32 %v2145_v48, %v2145_v48 }
 0x316   :  { %v960_v46 = vadd.f32 %v2142_v31, %v938_v60  ;;  %v939_v51 = vmul.f32 %v2129_v47, %v917_v38  ;;  %v785_v17 = vpop.xlane.xlu0 %784 }
 0x317   :  { %1523 = vrsqrt.f32 %v888_v44  ;;  %v889_v23 = vadd.f32 1e-05, %v857_v5  ;;  %v810_v30 = vmul.f32 0.0078125, %v785_v17  ;;  %v827_v19 = vmul.f32 %v2153_v53, %v2153_v53 }
 0x318   :  { %v1166_v2 = vadd.f32 %v1104_v28, %v960_v46  ;;  %v961_v3 = vadd.f32 %v2142_v31, %v939_v51  ;;  %v787_v8 = vpop.xlane.xlu1 %786 }
 0x319   :  { %v1520_v58 = vpop.eup %1519  ;;  %1525 = vrsqrt.f32 %v889_v23  ;;  %v842_v13 = vsub.f32 %v810_v30, %v826_v56  ;;  %v811_v32 = vmul.f32 0.0078125, %v787_v8 }
 0x31a   :  { %v918_v24 = vmul.f32 %v1520_v58, %v870_v10  ;;  %v1167_v29 = vadd.f32 %v1107_v6, %v961_v3  ;;  %v725_v35 = vpop.xlane.xlu0 %724  ;;  %v1182_v45 = vmax.f32 %v1166_v2, 0.0  ;;  %v1115_v10 = vadd.f32 %v2048_v20, %v2136_v0 }
 0x31b   :  { %v1522_v50 = vpop.eup %1521  ;;  %v858_v28 = vmax.f32 %v842_v13, 0.0  ;;  %v2165_v38 = vmul.f32 0.0078125, %v725_v35  ;;  %v843_v34 = vsub.f32 %v811_v32, %v827_v19  ;;  %v872_v6 = vsub.f32 %v2006_v54, %v2119_v43 }
 0x31c   :  { %v940_v36 = vmul.f32 %v2129_v47, %v918_v24  ;;  %v919_v60 = vmul.f32 %v1522_v50, %v871_v49  ;;  %v1183_v16 = vmax.f32 %v1167_v29, 0.0  ;;  %v727_v44 = vpop.xlane.xlu1 %726  ;;  %v873_v19 = vsub.f32 %v2009_v55, %v2121_v52 }
 0x31d   :  { %v890_v51 = vadd.f32 1e-05, %v858_v28  ;;  %v859_v23 = vmax.f32 %v843_v34, 0.0  ;;  %v828_v56 = vmul.f32 %v2165_v38, %v2165_v38  ;;  %v2175_v30 = vmul.f32 0.0078125, %v727_v44 }
 0x31e   :  { %v962_v5 = vadd.f32 %v2142_v31, %v940_v36  ;;  %v941_v46 = vmul.f32 %v2129_v47, %v919_v60  ;;  %v1198_v17 = vpack.c.bf16 %v1183_v16, %v1182_v45  ;;  %v789_v21 = vpop.xlane.xlu0 %788  ;;  %v1120_v16 = vadd.f32 %v2136_v0, %v2079_v63 }
 0x31f   :  { %1527 = vrsqrt.f32 %v890_v51  ;;  %v812_v3 = vmul.f32 0.0078125, %v789_v21  ;;  %v891_v8 = vadd.f32 1e-05, %v859_v23  ;;  %v829_v13 = vmul.f32 %v2175_v30, %v2175_v30 }
 0x320   :  { %v1168_v58 = vadd.f32 %v1112_v25, %v962_v5  ;;  %v963_v2 = vadd.f32 %v2142_v31, %v941_v46  ;;  %v791_v49 = vpop.xlane.xlu1 %790  ;;  %1433 = vmatpush3.bf16.xpose.msra.mxu1 %v1198_v17  ;;  %v874_v63 = vsub.f32 %v2018_v1, %v2145_v48  ;;  %v875_v48 = vsub.f32 %v2021_v27, %v2153_v53 }
 0x321   :  { %v1524_v20 = vpop.eup %1523  ;;  %v844_v50 = vsub.f32 %v812_v3, %v828_v56  ;;  %v813_v29 = vmul.f32 0.0078125, %v791_v49  ;;  %1434 = vmatprep.subr.bf16.mxu1 %v1571_v11  ;;  %1529 = vrsqrt.f32 %v891_v8  ;;  %v1123_v3 = vadd.f32 %v2136_v0, %v2087_v57 }
 0x322   :  { %v1169_v24 = vadd.f32 %v1115_v10, %v963_v2  ;;  %v1184_v32 = vmax.f32 %v1168_v58, 0.0  ;;  %v920_v35 = vmul.f32 %v1524_v20, %v872_v6  ;;  %v729_v36 = vpop.xlane.xlu0 %728 }
 0x323   :  { %v1526_v54 = vpop.eup %1525  ;;  %v860_v60 = vmax.f32 %v844_v50, 0.0  ;;  %v845_v28 = vsub.f32 %v813_v29, %v829_v13  ;;  %v2185_v25 = vmul.f32 0.0078125, %v729_v36 }
 0x324   :  { %v1185_v43 = vmax.f32 %v1169_v24, 0.0  ;;  %v942_v45 = vmul.f32 %v2129_v47, %v920_v35  ;;  %v921_v34 = vmul.f32 %v1526_v54, %v873_v19  ;;  %v731_v44 = vpop.xlane.xlu1 %730 }
 0x325   :  { %v892_v46 = vadd.f32 1e-05, %v860_v60  ;;  %v861_v55 = vmax.f32 %v845_v28, 0.0  ;;  %v2192_v51 = vmul.f32 0.0078125, %v731_v44  ;;  %v830_v56 = vmul.f32 %v2185_v25, %v2185_v25 }
 0x326   :  { %v1199_v5 = vpack.c.bf16 %v1185_v43, %v1184_v32  ;;  %v964_v52 = vadd.f32 %v2142_v31, %v942_v45  ;;  %v943_v10 = vmul.f32 %v2129_v47, %v921_v34  ;;  %v793_v17 = vpop.xlane.xlu0 %792  ;;  %v1128_v60 = vadd.f32 %v2074_v62, %v2136_v0 }
 0x327   :  { %1531 = vrsqrt.f32 %v892_v46  ;;  %v893_v23 = vadd.f32 1e-05, %v861_v55  ;;  %v814_v21 = vmul.f32 0.0078125, %v793_v17  ;;  %v831_v49 = vmul.f32 %v2192_v51, %v2192_v51 }
 0x328   :  { %v1170_v58 = vadd.f32 %v1120_v16, %v964_v52  ;;  %v965_v2 = vadd.f32 %v2142_v31, %v943_v10  ;;  %v795_v6 = vpop.xlane.xlu1 %794  ;;  %1435 = vmatpush3.bf16.xpose.msra.mxu1 %v1199_v5  ;;  %v876_v62 = vsub.f32 %v2028_v4, %v2165_v38  ;;  %v1131_v17 = vadd.f32 %v2081_v33, %v2136_v0 }
 0x329   :  { %v1528_v8 = vpop.eup %1527  ;;  %1533 = vrsqrt.f32 %v893_v23  ;;  %v846_v20 = vsub.f32 %v814_v21, %v830_v56  ;;  %v815_v24 = vmul.f32 0.0078125, %v795_v6  ;;  %1436 = vmatprep.subr.bf16.mxu1 %v1571_v11  ;;  %v877_v4 = vsub.f32 %v2033_v9, %v2175_v30 }
 0x32a   :  { %v922_v13 = vmul.f32 %v1528_v8, %v874_v63  ;;  %v1171_v50 = vadd.f32 %v1123_v3, %v965_v2  ;;  %v733_v1 = vpop.xlane.xlu0 %732  ;;  %v1186_v36 = vmax.f32 %v1170_v58, 0.0 }
 0x32b   :  { %v862_v29 = vmax.f32 %v846_v20, 0.0  ;;  %v847_v19 = vsub.f32 %v815_v24, %v831_v49  ;;  %v2206_v57 = vmul.f32 0.0078125, %v733_v1  ;;  %v1530_v32 = vpop.eup %1529 }
 0x32c   :  { %v944_v35 = vmul.f32 %v2129_v47, %v922_v13  ;;  %v1187_v54 = vmax.f32 %v1171_v50, 0.0  ;;  %v735_v43 = vpop.xlane.xlu1 %734  ;;  %v923_v28 = vmul.f32 %v1530_v32, %v875_v48  ;;  %v1136_v13 = vadd.f32 %v2136_v0, %v2096_v12 }
 0x32d   :  { %v894_v45 = vadd.f32 1e-05, %v862_v29  ;;  %v863_v16 = vmax.f32 %v847_v19, 0.0  ;;  %v832_v27 = vmul.f32 %v2206_v57, %v2206_v57  ;;  %v2214_v53 = vmul.f32 0.0078125, %v735_v43 }
 0x32e   :  { %v966_v34 = vadd.f32 %v2142_v31, %v944_v35  ;;  %v1200_v44 = vpack.c.bf16 %v1187_v54, %v1186_v36  ;;  %v797_v5 = vpop.xlane.xlu0 %796  ;;  %v945_v46 = vmul.f32 %v2129_v47, %v923_v28  ;;  %v878_v28 = vsub.f32 %v2046_v7, %v2185_v25 }
 0x32f   :  { %1535 = vrsqrt.f32 %v894_v45  ;;  %v895_v55 = vadd.f32 1e-05, %v863_v16  ;;  %v816_v52 = vmul.f32 0.0078125, %v797_v5  ;;  %v833_v23 = vmul.f32 %v2214_v53, %v2214_v53 }
 0x330   :  { %v1172_v10 = vadd.f32 %v1128_v60, %v966_v34  ;;  %v799_v56 = vpop.xlane.xlu1 %798  ;;  %1437 = vmatpush3.bf16.xpose.msra.mxu1 %v1200_v44  ;;  %v967_v63 = vadd.f32 %v2142_v31, %v945_v46  ;;  %v1139_v34 = vadd.f32 %v2136_v0, %v2100_v40 }
 0x331   :  { %v1532_v21 = vpop.eup %1531  ;;  %1537 = vrsqrt.f32 %v895_v55  ;;  %v848_v58 = vsub.f32 %v816_v52, %v832_v27  ;;  %v817_v2 = vmul.f32 0.0078125, %v799_v56  ;;  %1438 = vmatprep.subr.bf16.mxu1 %v1571_v11  ;;  %v879_v52 = vsub.f32 %v2051_v22, %v2192_v51 }
 0x332   :  { %v924_v38 = vmul.f32 %v1532_v21, %v876_v62  ;;  %v737_v3 = vpop.xlane.xlu0 %736  ;;  %v1173_v33 = vadd.f32 %v1131_v17, %v967_v63  ;;  %v1188_v48 = vmax.f32 %v1172_v10, 0.0 }
 0x333   :  { %v1534_v6 = vpop.eup %1533  ;;  %v864_v8 = vmax.f32 %v848_v58, 0.0  ;;  %v849_v49 = vsub.f32 %v817_v2, %v833_v23  ;;  %v2227_v20 = vmul.f32 0.0078125, %v737_v3  ;;  %v880_v3 = vsub.f32 %v2060_v26, %v2206_v57 }
 0x334   :  { %v946_v24 = vmul.f32 %v2129_v47, %v924_v38  ;;  %v925_v50 = vmul.f32 %v1534_v6, %v877_v4  ;;  %v739_v1 = vpop.xlane.xlu1 %738  ;;  %v1189_v29 = vmax.f32 %v1173_v33, 0.0  ;;  %v1144_v4 = vadd.f32 %v2094_v59, %v2136_v0 }
 0x335   :  { %v896_v19 = vadd.f32 1e-05, %v864_v8  ;;  %v865_v32 = vmax.f32 %v849_v49, 0.0  ;;  %v834_v30 = vmul.f32 %v2227_v20, %v2227_v20  ;;  %v2236_v36 = vmul.f32 0.0078125, %v739_v1 }
 0x336   :  { %v968_v9 = vadd.f32 %v2142_v31, %v946_v24  ;;  %v947_v35 = vmul.f32 %v2129_v47, %v925_v50  ;;  %v801_v54 = vpop.xlane.xlu0 %800  ;;  %v1201_v43 = vpack.c.bf16 %v1189_v29, %v1188_v48  ;;  %v1147_v8 = vadd.f32 %v2098_v39, %v2136_v0 }
 0x337   :  { %1539 = vrsqrt.f32 %v896_v19  ;;  %v897_v60 = vadd.f32 1e-05, %v865_v32  ;;  %v818_v12 = vmul.f32 0.0078125, %v801_v54  ;;  %v835_v5 = vmul.f32 %v2236_v36, %v2236_v36 }
 0x338   :  { %v1174_v45 = vadd.f32 %v1136_v13, %v968_v9  ;;  %v969_v16 = vadd.f32 %v2142_v31, %v947_v35  ;;  %v803_v44 = vpop.xlane.xlu1 %802  ;;  %1439 = vmatpush3.bf16.xpose.msra.mxu1 %v1201_v43  ;;  %v881_v59 = vsub.f32 %v2065_v37, %v2214_v53  ;;  %v1152_v26 = vadd.f32 %v2136_v0, %v2104_v42 }
 0x339   :  { %v1536_v27 = vpop.eup %1535  ;;  %1541 = vrsqrt.f32 %v897_v60  ;;  %v850_v46 = vsub.f32 %v818_v12, %v834_v30  ;;  %v819_v55 = vmul.f32 0.0078125, %v803_v44  ;;  %1440 = vmatprep.subr.bf16.mxu1 %v1571_v11  ;;  %v882_v37 = vsub.f32 %v2077_v18, %v2227_v20 }
 0x33a   :  { %v926_v62 = vmul.f32 %v1536_v27, %v878_v28  ;;  %v1175_v7 = vadd.f32 %v1139_v34, %v969_v16  ;;  %v1190_v23 = vmax.f32 %v1174_v45, 0.0  ;;  %v1155_v30 = vadd.f32 %v2136_v0, %v2108_v14 }
 0x33b   :  { %v1538_v25 = vpop.eup %1537  ;;  %v866_v10 = vmax.f32 %v850_v46, 0.0  ;;  %v851_v17 = vsub.f32 %v819_v55, %v835_v5  ;;  %v883_v35 = vsub.f32 %v2084_v61, %v2236_v36  ;;  %v1160_v14 = vadd.f32 %v2102_v41, %v2136_v0  ;;  %v1206_v41 = vld [vmem:[%s2310_s12] sm:$0xf] }
 0x33c   :  { %v948_v40 = vmul.f32 %v2129_v47, %v926_v62  ;;  %v927_v56 = vmul.f32 %v1538_v25, %v879_v52  ;;  %v1191_v21 = vmax.f32 %v1175_v7, 0.0  ;;  %v1163_v36 = vadd.f32 %v2106_v15, %v2136_v0 }
 0x33d   :  { %v898_v63 = vadd.f32 1e-05, %v866_v10  ;;  %v867_v58 = vmax.f32 %v851_v17, 0.0 }
 0x33e   :  { %v970_v2 = vadd.f32 %v2142_v31, %v948_v40  ;;  %v949_v22 = vmul.f32 %v2129_v47, %v927_v56  ;;  %v1202_v51 = vpack.c.bf16 %v1191_v21, %v1190_v23 }
 0x33f   :  { %1543 = vrsqrt.f32 %v898_v63  ;;  %v899_v38 = vadd.f32 1e-05, %v867_v58 }
 0x340   :  { %v1176_v6 = vadd.f32 %v1144_v4, %v970_v2  ;;  %v971_v33 = vadd.f32 %v2142_v31, %v949_v22  ;;  %1441 = vmatpush3.bf16.xpose.msra.mxu1 %v1202_v51 }
 0x341   :  { %v1540_v49 = vpop.eup %1539  ;;  %1545 = vrsqrt.f32 %v899_v38  ;;  %1442 = vmatprep.subr.bf16.mxu1 %v1571_v11 }
 0x342   :  { %v1177_v24 = vadd.f32 %v1147_v8, %v971_v33  ;;  %v928_v13 = vmul.f32 %v1540_v49, %v880_v3  ;;  %v1192_v57 = vmax.f32 %v1176_v6, 0.0 }
 0x343   :  { %v1542_v50 = vpop.eup %1541 }
 0x344   :  { %v1193_v1 = vmax.f32 %v1177_v24, 0.0  ;;  %v950_v48 = vmul.f32 %v2129_v47, %v928_v13  ;;  %v929_v29 = vmul.f32 %v1542_v50, %v881_v59 }
 0x346   :  { %v1203_v39 = vpack.c.bf16 %v1193_v1, %v1192_v57  ;;  %v972_v19 = vadd.f32 %v2142_v31, %v950_v48  ;;  %v951_v32 = vmul.f32 %v2129_v47, %v929_v29 }
 0x348   :  { %v1178_v53 = vadd.f32 %v1152_v26, %v972_v19  ;;  %v973_v9 = vadd.f32 %v2142_v31, %v951_v32  ;;  %1443 = vmatpush3.bf16.xpose.msra.mxu1 %v1203_v39 }
 0x349   :  { %v1544_v42 = vpop.eup %1543  ;;  %1444 = vmatprep.subr.bf16.mxu1 %v1571_v11 }
 0x34a   :  { %v930_v54 = vmul.f32 %v1544_v42, %v882_v37  ;;  %v1179_v43 = vadd.f32 %v1155_v30, %v973_v9  ;;  %v1194_v28 = vmax.f32 %v1178_v53, 0.0 }
 0x34b   :  { %v1546_v60 = vpop.eup %1545 }
 0x34c   :  { %v952_v12 = vmul.f32 %v2129_v47, %v930_v54  ;;  %v931_v18 = vmul.f32 %v1546_v60, %v883_v35  ;;  %v1195_v20 = vmax.f32 %v1179_v43, 0.0 }
 0x34e   :  { %v974_v45 = vadd.f32 %v2142_v31, %v952_v12  ;;  %v953_v16 = vmul.f32 %v2129_v47, %v931_v18  ;;  %v1204_v34 = vpack.c.bf16 %v1195_v20, %v1194_v28  ;;  %v1253_v47 = vlaneseq }
 0x350   :  { %v1180_v44 = vadd.f32 %v1160_v14, %v974_v45  ;;  %v975_v61 = vadd.f32 %v2142_v31, %v953_v16  ;;  %1445 = vmatpush3.bf16.xpose.msra.mxu1 %v1204_v34  ;;  %v1254_v52 = vshrl.u32 %v1253_v47, 7  ;;  %v1251_v31 = vpop.permute.xlu0 %1250 }
 0x351   :  { %1446 = vmatprep.subr.bf16.mxu1 %v1571_v11 }
 0x352   :  { %v1181_v27 = vadd.f32 %v1163_v36, %v975_v61  ;;  %v1196_v5 = vmax.f32 %v1180_v44, 0.0  ;;  %v1255_v62 = vsub.s32 0, %v1254_v52 }
 0x354   :  { %v1197_v46 = vmax.f32 %v1181_v27, 0.0  ;;  %v1256_v7 = vrot.slane %v1251_v31, %v1255_v62 }
 0x356   :  { %v1205_v55 = vpack.c.bf16 %v1197_v46, %v1196_v5 }
 0x358   :  { %1447 = vmatpush3.bf16.xpose.msra.mxu1 %v1205_v55 }
 0x35f   :  { %1449 = vmatmul.mubr.bf16.vlgmr.msra.gmra.mrb[16].mxu1 %v1206_v41 }
 0x432   :  { %v1241_v15 = vpop.f32.mrb[16].mxu1 }
 0x433   :  { %v1257_v0 = vadd.f32 %v1256_v7, %v1241_v15  ;;  %v1450_v25 = vpop.f32.mrb[17].mxu1 }
 0x434   :  { %v1244_v11 = vpop.f32.mrb[18].mxu1 }
 0x435   :  { %1258 = vst [vmem:[#allocation3] sm:$0x1] %v1257_v0  ;;  %v1451_v10 = vpop.f32.mrb[19].mxu1 }
 0x436   :  { %1558 = shalt.err (!%p1555_p4)
}
 0x437   :  { %s1559_s10 = scalar_lea.hbm %s2312_s14, 16 }
 0x438   :  { %p1560_p5 = scmp.ne.s32.totalorder %s2312_s14, %s1559_s10  ;;  %p1563_p6 = scmp.lt.u32.totalorder %s1559_s10, %s2312_s14 }
 0x43a   :  { %p1565_p7 = pnand %p1563_p6, %p1560_p5 }
 0x43c   :  { %1568 = shalt.err (!%p1565_p7)
}
 0x43d   :  { %1268 = dma.vmem_to_hbm [thread:$0]  %s1266_s16, 16, %s2312_s14, [#allocation4]  }
 0x43e   :  { %1569 = dma.done.wait [#allocation4], 16  }
 0x43f   :  { %1570 = vsyncadd [#allocation4], 4294967280 }
 0x440   :  { %1272 = vsyncpa [#allocation4], 1 }

</bundles_post_ra>
